<compile_context>
chip_gen: v7x
topology: tpu7x:2x2x1
jax: 0.10.0
libtpu: 0.0.40
codegen_flags: <defaults>
</compile_context>

<pallas_src>
import functools

import jax
import jax.numpy as jnp
import numpy as np
from jax.experimental import pallas as pl
from jax.experimental.pallas import tpu as pltpu


def _round_up(x, m):
    return -(-x // m) * m


@functools.lru_cache(maxsize=None)
def _vmem_limit_bytes():
    """Per-generation VMEM limit: ~75% of physical, capped at 100 MiB.
    v7x (64 MiB physical) -> 48 MiB; v5e/v6e (128 MiB) -> 96 MiB."""
    cap = 64 * 1024 * 1024
    try:
        c = int(pltpu.get_tpu_info().vmem_capacity_bytes)
        if 32 * 1024 * 1024 <= c <= 256 * 1024 * 1024:
            cap = c
    except Exception:
        pass
    return int(min(cap * 3 // 4, 100 * 1024 * 1024))


def _pick_n_chunk(n_rows, target=128):
    """Batch rows per grid step: big enough to feed the MXU rows in the
    recurrent h@Whh matmul, while keeping >=2 batch chunks when possible so
    the 'parallel' grid axis can shard across v7x's two TensorCores.
    (target can be raised to 256 on v6e/v7x for large batches.)"""
    n8 = _round_up(n_rows, 8)
    if n8 >= 2 * target:
        return target
    if n8 >= 16:
        return _round_up(n8, 16) // 2
    return 8


def _pick_t_chunk(seq_len, embed, t_max=32):
    """Time steps per grid step.  Kept modest so the recurrence is a fully
    static (unrolled) loop (no vreg-spill / compile blow-up); longer sequences
    are covered by the grid's 'arbitrary' time axis.  (t_chunk*E) must be a
    multiple of 128 lanes unless it spans the whole sequence."""
    for t in range(min(seq_len, t_max), 0, -1):
        if seq_len % t == 0 and ((t * embed) % 128 == 0 or t == seq_len):
            return t
    return seq_len


# ----------------------------------------------------------------------------
# Kernel 1: fused-gate LSTM (PyTorch nn.LSTM, batch_first, 1 layer, h0=c0=0)
#
# Batch-major, lane-dense layout: x is [N_pad, S*E] f32, output h is
# [N_pad, S*E] bf16.  Fused weights are [E, 4E] (gate order i, f, g, o along
# the lane axis == torch weight_ih_l0.T / weight_hh_l0.T); bias is [1, 4E]
# (= b_ih + b_hh).  Grid = (batch_chunks, time_chunks); h/c live in persistent
# VMEM scratch and are re-zeroed at time chunk 0 of every batch chunk.
# ----------------------------------------------------------------------------
def lstm_kernel(x_ref, wih_ref, whh_ref, b_ref, h_out_ref, h_scr, c_scr,
                *, embed, t_chunk):
    E = embed
    n_chunk = x_ref.shape[0]

    # Reset recurrent state at the first time chunk of every batch chunk
    # (time is the innermost, "arbitrary" grid axis).
    @pl.when(pl.program_id(1) == 0)
    def _():
        h_scr[...] = jnp.zeros_like(h_scr)
        c_scr[...] = jnp.zeros_like(c_scr)

    # Hoist fused weights / bias / gate-select mask into vregs once per chunk.
    wih = wih_ref[...]           # [E, 4E]
    whh = whh_ref[...]           # [E, 4E]
    bias = b_ref[...]            # [1, 4E]
    lane = jax.lax.broadcasted_iota(jnp.int32, (n_chunk, 4 * E), 1)
    g_sel = (lane >= 2 * E) & (lane < 3 * E)      # lanes of the tanh ("g") gate

    h = h_scr[...]
    c = c_scr[...]

    # Static (unrolled) recurrence over the time chunk.  t_chunk <= 32 so full
    # unrolling stays cheap; there is no "unroll the whole sequence" fallback.
    for t in range(t_chunk):
        x_t = x_ref[:, t * E:(t + 1) * E]          # [n, E]  static lane slice
        # x@Wih does not depend on h -> off the serial chain (scheduler
        # overlaps it); only h@Whh is serial.
        gates = (jnp.dot(x_t, wih, preferred_element_type=jnp.float32)
                 + jnp.dot(h, whh, preferred_element_type=jnp.float32)
                 + bias)                            # [n, 4E]
        # Two full-width EUP passes + per-lane select instead of 4 narrow ones.
        sig = jax.nn.sigmoid(gates)
        tah = jnp.tanh(gates)
        act = jnp.where(g_sel, tah, sig)
        i_g = act[:, 0 * E:1 * E]
        f_g = act[:, 1 * E:2 * E]
        g_g = act[:, 2 * E:3 * E]
        o_g = act[:, 3 * E:4 * E]
        c = f_g * c + i_g * g_g
        h = o_g * jnp.tanh(c)
        # bf16 store into the lane-dense [n, t_chunk*E] output block.
        h_out_ref[:, t * E:(t + 1) * E] = h.astype(h_out_ref.dtype)

    h_scr[...] = h
    c_scr[...] = c


def run_lstm(x2d, w_ih, w_hh, bias, *, seq_len, n_chunk, t_chunk=None):
    """x2d: [N_pad, S*E] float32 (batch-major, lane-dense).
    Returns hidden states as [N_pad, S*E] bfloat16."""
    n_pad, se = x2d.shape
    E = w_ih.shape[0]
    S = seq_len
    assert se == S * E and n_pad % n_chunk == 0
    if t_chunk is None:
        t_chunk = _pick_t_chunk(S, E)
    assert S % t_chunk == 0
    grid = (n_pad // n_chunk, S // t_chunk)

    kernel = functools.partial(lstm_kernel, embed=E, t_chunk=t_chunk)
    return pl.pallas_call(
        kernel,
        out_shape=jax.ShapeDtypeStruct((n_pad, S * E), jnp.bfloat16),
        grid_spec=pltpu.PrefetchScalarGridSpec(
            num_scalar_prefetch=0,
            grid=grid,
            in_specs=[
                pl.BlockSpec((n_chunk, t_chunk * E), lambda nb, t: (nb, t)),
                pl.BlockSpec((E, 4 * E), lambda nb, t: (0, 0)),
                pl.BlockSpec((E, 4 * E), lambda nb, t: (0, 0)),
                pl.BlockSpec((1, 4 * E), lambda nb, t: (0, 0)),
            ],
            out_specs=pl.BlockSpec((n_chunk, t_chunk * E), lambda nb, t: (nb, t)),
            scratch_shapes=[
                pltpu.VMEM((n_chunk, E), jnp.float32),    # h state (persistent)
                pltpu.VMEM((n_chunk, E), jnp.float32),    # c state (persistent)
            ],
        ),
        compiler_params=pltpu.CompilerParams(
            dimension_semantics=("parallel", "arbitrary"),
            vmem_limit_bytes=_vmem_limit_bytes(),
        ),
    )(x2d, w_ih, w_hh, bias)


# ----------------------------------------------------------------------------
# Kernel 2: masked dot-product similarity + softmax + argmax
#
# Inputs are lane-dense K = S*E slabs: src [B, C, K] bf16, q/mask [B, 1, K].
# Several batches per grid step; the contraction is a mat-vec so it runs on
# the VPU (multiply) + XLU (lane reduce) rather than wasting MXU columns.
# Argmax is taken on pre-softmax logits (softmax is monotonic) with first-max
# tie-breaking like torch/np.
# ----------------------------------------------------------------------------
def sim_kernel(src_ref, q_ref, mask_ref, sim_ref, top_ref):
    src = src_ref[...].astype(jnp.float32)                         # [Bt, C, K]
    qm = q_ref[...].astype(jnp.float32) * mask_ref[...].astype(jnp.float32)
    s = jnp.sum(src * qm, axis=-1)                                 # [Bt, C]
    m = jnp.max(s, axis=-1, keepdims=True)
    e = jnp.exp(s - m)
    sim_ref[...] = e / jnp.sum(e, axis=-1, keepdims=True)
    num_ctx = s.shape[-1]
    idx = jax.lax.broadcasted_iota(jnp.int32, s.shape, 1)
    top_ref[...] = jnp.min(jnp.where(s == m, idx, jnp.int32(num_ctx)),
                           axis=-1, keepdims=True)


def run_sim(src_flat, q_flat, mask_flat):
    B, C, K = src_flat.shape
    bt = B if B <= 8 else 8
    b_pad = _round_up(B, bt)
    if b_pad > B:
        pad = [(0, b_pad - B), (0, 0), (0, 0)]
        src_flat = jnp.pad(src_flat, pad)
        q_flat = jnp.pad(q_flat, pad)
        mask_flat = jnp.pad(mask_flat, pad)

    sims, top = pl.pallas_call(
        sim_kernel,
        out_shape=(jax.ShapeDtypeStruct((b_pad, C), jnp.float32),
                   jax.ShapeDtypeStruct((b_pad, 1), jnp.int32)),
        grid=(b_pad // bt,),
        in_specs=[
            pl.BlockSpec((bt, C, K), lambda b: (b, 0, 0)),
            pl.BlockSpec((bt, 1, K), lambda b: (b, 0, 0)),
            pl.BlockSpec((bt, 1, K), lambda b: (b, 0, 0)),
        ],
        out_specs=(pl.BlockSpec((bt, C), lambda b: (b, 0)),
                   pl.BlockSpec((bt, 1), lambda b: (b, 0))),
        compiler_params=pltpu.CompilerParams(
            dimension_semantics=("parallel",),
            vmem_limit_bytes=_vmem_limit_bytes(),
        ),
    )(src_flat, q_flat, mask_flat)
    return sims[:B], top[:B, 0]


# ----------------------------------------------------------------------------
# Wrapper reproducing LSTMCosine.forward
# ----------------------------------------------------------------------------
def lstm_cosine_forward(sources, queries, context_len, params):
    """
    sources:     int32 [B*C, S]   (src_seq == q_seq == S here)
    queries:     int32 [B, S]
    context_len: python list, length B (all equal, as torch.stack requires)
    returns (selected_sources [B, S] int32, similarities [B, C] float32)
    """
    emb_table = params["embedding"]
    w_ih, w_hh, b = params["w_ih"], params["w_hh"], params["b"]
    V, E = emb_table.shape
    unk_id = params["unk_id"]

    # unk_tensor(): replace out-of-vocab ids with <UNK>
    src_ids = jnp.where(sources >= V, unk_id, sources)
    q_ids = jnp.where(queries >= V, unk_id, queries)

    # embedding lookup (glue)
    emb_src = jnp.take(emb_table, src_ids, axis=0)        # [B*C, S, E]
    emb_q = jnp.take(emb_table, q_ids, axis=0)            # [B, S, E]

    B, S = queries.shape
    C = int(context_len[0])
    assert all(int(c) == C for c in context_len)          # torch.stack requires it
    BC = B * C

    # Single LSTM call: sources + queries concatenated, batch-major, lane-dense
    # [N, S*E] (no transposes), padded to a multiple of n_chunk rows.
    x = jnp.concatenate([emb_src, emb_q], axis=0)         # [BC+B, S, E]
    N = BC + B
    n_chunk = _pick_n_chunk(N)
    n_pad = _round_up(N, n_chunk)
    if n_pad > N:
        x = jnp.concatenate([x, jnp.zeros((n_pad - N, S, E), x.dtype)], axis=0)
    x2d = x.reshape(n_pad, S * E)                          # free reshape

    h2d = run_lstm(x2d, w_ih, w_hh, b, seq_len=S, n_chunk=n_chunk)  # bf16 [n_pad, S*E]
    enc_src = h2d[:BC].reshape(B, C, S * E)
    enc_q = h2d[BC:BC + B].reshape(B, 1, S * E)

    # q_len = #non-pad query tokens (same as the PyTorch q_mask/q_len logic);
    # masking the K axis reproduces the [:q_len] slicing of both operands.
    q_len = jnp.sum((queries > 0).astype(jnp.int32), axis=1)        # [B]
    mask = jnp.arange(S)[None, :] < q_len[:, None]                  # [B, S] bool
    mask_flat = (jnp.broadcast_to(mask[:, :, None], (B, S, E))
                 .reshape(B, 1, S * E).astype(jnp.bfloat16))

    sims, top = run_sim(enc_src, enc_q, mask_flat)         # [B, C], [B]

    offsets = jnp.arange(B, dtype=jnp.int32) * C
    selected = jnp.take(sources, offsets + top, axis=0)    # original (non-UNK'd) rows
    return selected, sims


# ----------------------------------------------------------------------------
# Pure-JAX reference (mirrors the PyTorch code) for a correctness check
# ----------------------------------------------------------------------------
def _ref_lstm(x_bte, w_ih, w_hh, b):
    N, T, E = x_bte.shape

    def step(carry, x_t):
        h, c = carry
        gates = x_t @ w_ih + h @ w_hh + b[0]
        i = jax.nn.sigmoid(gates[:, 0 * E:1 * E])
        f = jax.nn.sigmoid(gates[:, 1 * E:2 * E])
        g = jnp.tanh(gates[:, 2 * E:3 * E])
        o = jax.nn.sigmoid(gates[:, 3 * E:4 * E])
        c = f * c + i * g
        h = o * jnp.tanh(c)
        return (h, c), h

    init = (jnp.zeros((N, E), jnp.float32), jnp.zeros((N, E), jnp.float32))
    _, hs = jax.lax.scan(step, init, jnp.transpose(x_bte, (1, 0, 2)))
    return jnp.transpose(hs, (1, 0, 2))


def _ref_forward(sources, queries, context_len, params):
    V = params["embedding"].shape[0]
    unk = params["unk_id"]
    src_ids = jnp.where(sources >= V, unk, sources)
    q_ids = jnp.where(queries >= V, unk, queries)
    enc_src = np.asarray(_ref_lstm(params["embedding"][src_ids],
                                   params["w_ih"], params["w_hh"], params["b"]))
    enc_q = np.asarray(_ref_lstm(params["embedding"][q_ids],
                                 params["w_ih"], params["w_hh"], params["b"]))
    sources_np, queries_np = np.asarray(sources), np.asarray(queries)
    b = queries_np.shape[0]
    q_len = (queries_np > 0).sum(1)
    c_idx, sims, sels = 0, [], []
    for i in range(b):
        C = int(context_len[i])
        tmp1 = enc_src[c_idx:c_idx + C, :q_len[i]]
        tmp2 = enc_q[i, :q_len[i]]
        s = (tmp1 * tmp2[None]).sum(2).sum(1)
        e = np.exp(s - s.max())
        sim = e / e.sum()
        sims.append(sim)
        sels.append(sources_np[c_idx + int(np.argmax(sim))])
        c_idx += C
    return np.stack(sels, 0), np.stack(sims, 0)


if __name__ == "__main__":
    # Small synthetic shapes implied by forward():
    #   B (batch) = 2, C (contexts per batch) = 4 -> sources has B*C = 8 rows,
    #   S (src_seq == q_seq) = 8, E (args.embed) = 32, vocab.count = 50.
    B, C, S, E, V = 2, 4, 8, 32, 50
    UNK_ID = 1

    key = jax.random.PRNGKey(0)
    ks = jax.random.split(key, 6)

    params = {
        "embedding": 0.1 * jax.random.normal(ks[0], (V, E), jnp.float32),
        # Fused-gate layout: columns ordered (i, f, g, o) == torch W_ih.T / W_hh.T
        "w_ih": 0.1 * jax.random.normal(ks[1], (E, 4 * E), jnp.float32),
        "w_hh": 0.1 * jax.random.normal(ks[2], (E, 4 * E), jnp.float32),
        "b": 0.1 * jax.random.normal(ks[3], (1, 4 * E), jnp.float32),   # b_ih + b_hh
        "unk_id": UNK_ID,
    }

    # token ids in [1, V+8) -> some ids >= V exercise the <UNK> replacement
    sources = jax.random.randint(ks[4], (B * C, S), 1, V + 8, dtype=jnp.int32)
    queries = jax.random.randint(ks[5], (B, S), 1, V + 8, dtype=jnp.int32)
    q_valid = jnp.array([6, 5], dtype=jnp.int32)            # per-batch query lengths
    queries = jnp.where(jnp.arange(S)[None, :] < q_valid[:, None], queries, 0)
    context_len = [C, C]                                    # equal (torch.stack requires it)

    selected, sims = lstm_cosine_forward(sources, queries, context_len, params)
    selected, sims = jax.block_until_ready((selected, sims))

    ref_sel, ref_sims = _ref_forward(sources, queries, context_len, params)
    sims_np = np.asarray(sims)
    sel_np = np.asarray(selected)
    src_np = np.asarray(sources)

    assert np.allclose(sims_np, ref_sims, rtol=2e-2, atol=5e-3), (sims_np, ref_sims)
    # Selection check, robust to bf16 near-ties: the kernel's choice must be
    # (near-)optimal under the f32 reference and the gathered row must match
    # the kernel's own argmax.
    top_k = sims_np.argmax(1)
    for i in range(B):
        assert ref_sims[i, top_k[i]] >= ref_sims[i].max() - 1e-3, (i, sims_np, ref_sims)
        assert np.array_equal(sel_np[i], src_np[i * C + top_k[i]]), (i, sel_np)

    print("KERNEL_OK")
</pallas_src>

<mosaic_0001>
module attributes {stable_mosaic.version = 11 : i64} {
  func.func @lstm_kernel(%arg0: i32, %arg1: i32, %arg2: memref<8x256xf32, #tpu.memory_space<vmem>>, %arg3: memref<32x128xf32, #tpu.memory_space<vmem>>, %arg4: memref<32x128xf32, #tpu.memory_space<vmem>>, %arg5: memref<1x128xf32, #tpu.memory_space<vmem>>, %arg6: memref<8x256xbf16, #tpu.memory_space<vmem>>, %arg7: memref<8x32xf32, #tpu.memory_space<vmem>>, %arg8: memref<8x32xf32, #tpu.memory_space<vmem>>) attributes {dimension_semantics = [#tpu.dimension_semantics<parallel>, #tpu.dimension_semantics<arbitrary>], iteration_bounds = array<i64: 2, 1>, scalar_prefetch = 0 : i64, scratch_operands = 2 : i64, tpu.core_type = #tpu.core_type<tc>, window_params = [{transform_indices = @transform_0, window_bounds = array<i64: 8, 256>}, {pipeline_mode = #tpu.pipeline_mode<synchronous>, transform_indices = @transform_1, window_bounds = array<i64: 32, 128>}, {pipeline_mode = #tpu.pipeline_mode<synchronous>, transform_indices = @transform_2, window_bounds = array<i64: 32, 128>}, {pipeline_mode = #tpu.pipeline_mode<synchronous>, transform_indices = @transform_3, window_bounds = array<i64: 1, 128>}, {transform_indices = @transform_4, window_bounds = array<i64: 8, 256>}]} {
    %c0_i32 = arith.constant 0 : i32
    %0 = arith.cmpi eq, %arg1, %c0_i32 : i32
    %1 = arith.extui %0 : i1 to i32
    %c0_i32_0 = arith.constant 0 : i32
    %2 = arith.cmpi ne, %1, %c0_i32_0 : i32
    scf.if %2 {
      %cst_62 = arith.constant 0.000000e+00 : f32
      %208 = vector.broadcast %cst_62 : f32 to vector<8x32xf32>
      %c0_63 = arith.constant 0 : index
      %c0_64 = arith.constant 0 : index
      %209 = vector.load %arg7[%c0_63, %c0_64] : memref<8x32xf32, #tpu.memory_space<vmem>>, vector<8x32xf32>
      tpu.vector_store %arg7[%c0_63, %c0_64], %208 {strides = array<i32>} : memref<8x32xf32, #tpu.memory_space<vmem>>, vector<8x32xf32>,
      %cst_65 = arith.constant 0.000000e+00 : f32
      %210 = vector.broadcast %cst_65 : f32 to vector<8x32xf32>
      %c0_66 = arith.constant 0 : index
      %c0_67 = arith.constant 0 : index
      %211 = vector.load %arg8[%c0_66, %c0_67] : memref<8x32xf32, #tpu.memory_space<vmem>>, vector<8x32xf32>
      tpu.vector_store %arg8[%c0_66, %c0_67], %210 {strides = array<i32>} : memref<8x32xf32, #tpu.memory_space<vmem>>, vector<8x32xf32>,
    } else {
    }
    %c0 = arith.constant 0 : index
    %c0_1 = arith.constant 0 : index
    %3 = vector.load %arg3[%c0, %c0_1] : memref<32x128xf32, #tpu.memory_space<vmem>>, vector<32x128xf32>
    %c0_2 = arith.constant 0 : index
    %c0_3 = arith.constant 0 : index
    %4 = vector.load %arg4[%c0_2, %c0_3] : memref<32x128xf32, #tpu.memory_space<vmem>>, vector<32x128xf32>
    %c0_4 = arith.constant 0 : index
    %c0_5 = arith.constant 0 : index
    %5 = vector.load %arg5[%c0_4, %c0_5] : memref<1x128xf32, #tpu.memory_space<vmem>>, vector<1x128xf32>
    %6 = tpu.iota {dimensions = array<i32: 1>} : vector<8x128xi32>
    %c64_i32 = arith.constant 64 : i32
    %7 = vector.broadcast %c64_i32 : i32 to vector<8x128xi32>
    %8 = arith.cmpi sge, %6, %7 : vector<8x128xi32>
    %c96_i32 = arith.constant 96 : i32
    %9 = vector.broadcast %c96_i32 : i32 to vector<8x128xi32>
    %10 = arith.cmpi slt, %6, %9 : vector<8x128xi32>
    %11 = arith.andi %8, %10 : vector<8x128xi1>
    %c0_6 = arith.constant 0 : index
    %c0_7 = arith.constant 0 : index
    %12 = vector.load %arg7[%c0_6, %c0_7] : memref<8x32xf32, #tpu.memory_space<vmem>>, vector<8x32xf32>
    %c0_8 = arith.constant 0 : index
    %c0_9 = arith.constant 0 : index
    %13 = vector.load %arg8[%c0_8, %c0_9] : memref<8x32xf32, #tpu.memory_space<vmem>>, vector<8x32xf32>
    %c0_10 = arith.constant 0 : index
    %c0_11 = arith.constant 0 : index
    %14 = vector.load %arg2[%c0_10, %c0_11] : memref<8x256xf32, #tpu.memory_space<vmem>>, vector<8x32xf32>
    %cst = arith.constant dense<0.000000e+00> : vector<8x128xf32>
    %15 = tpu.matmul %14, %3, %cst {dimension_numbers = #tpu.dot_dimension_numbers<[1], [0], [0], [1], [0, 0, 1, 1], [], []>} : vector<8x32xf32>, vector<32x128xf32>, vector<8x128xf32> -> vector<8x128xf32>
    %cst_12 = arith.constant dense<0.000000e+00> : vector<8x128xf32>
    %16 = tpu.matmul %12, %4, %cst_12 {dimension_numbers = #tpu.dot_dimension_numbers<[1], [0], [0], [1], [0, 0, 1, 1], [], []>} : vector<8x32xf32>, vector<32x128xf32>, vector<8x128xf32> -> vector<8x128xf32>
    %17 = arith.addf %15, %16 : vector<8x128xf32>
    %18 = vector.broadcast %5 : vector<1x128xf32> to vector<8x128xf32>
    %19 = arith.addf %17, %18 : vector<8x128xf32>
    %20 = arith.negf %19 : vector<8x128xf32>
    %21 = math.exp %20 : vector<8x128xf32>
    %cst_13 = arith.constant 1.000000e+00 : f32
    %22 = vector.broadcast %cst_13 : f32 to vector<8x128xf32>
    %23 = arith.addf %22, %21 : vector<8x128xf32>
    %24 = arith.divf %22, %23 : vector<8x128xf32>
    %25 = math.tanh %19 : vector<8x128xf32>
    %26 = arith.select %11, %25, %24 : vector<8x128xi1>, vector<8x128xf32>
    %27 = vector.extract_strided_slice %26 {offsets = [0, 0], sizes = [8, 32], strides = [1, 1]} : vector<8x128xf32> to vector<8x32xf32>
    %28 = vector.extract_strided_slice %26 {offsets = [0, 32], sizes = [8, 32], strides = [1, 1]} : vector<8x128xf32> to vector<8x32xf32>
    %29 = vector.extract_strided_slice %26 {offsets = [0, 64], sizes = [8, 32], strides = [1, 1]} : vector<8x128xf32> to vector<8x32xf32>
    %30 = vector.extract_strided_slice %26 {offsets = [0, 96], sizes = [8, 32], strides = [1, 1]} : vector<8x128xf32> to vector<8x32xf32>
    %31 = arith.mulf %28, %13 : vector<8x32xf32>
    %32 = arith.mulf %27, %29 : vector<8x32xf32>
    %33 = arith.addf %31, %32 : vector<8x32xf32>
    %34 = math.tanh %33 : vector<8x32xf32>
    %35 = arith.mulf %30, %34 : vector<8x32xf32>
    %36 = arith.truncf %35 : vector<8x32xf32> to vector<8x32xbf16>
    %c0_14 = arith.constant 0 : index
    %c0_15 = arith.constant 0 : index
    %37 = vector.load %arg6[%c0_14, %c0_15] : memref<8x256xbf16, #tpu.memory_space<vmem>>, vector<8x32xbf16>
    tpu.vector_store %arg6[%c0_14, %c0_15], %36 {strides = array<i32>} : memref<8x256xbf16, #tpu.memory_space<vmem>>, vector<8x32xbf16>,
    %c0_16 = arith.constant 0 : index
    %c32 = arith.constant 32 : index
    %38 = vector.load %arg2[%c0_16, %c32] : memref<8x256xf32, #tpu.memory_space<vmem>>, vector<8x32xf32>
    %cst_17 = arith.constant dense<0.000000e+00> : vector<8x128xf32>
    %39 = tpu.matmul %38, %3, %cst_17 {dimension_numbers = #tpu.dot_dimension_numbers<[1], [0], [0], [1], [0, 0, 1, 1], [], []>} : vector<8x32xf32>, vector<32x128xf32>, vector<8x128xf32> -> vector<8x128xf32>
    %cst_18 = arith.constant dense<0.000000e+00> : vector<8x128xf32>
    %40 = tpu.matmul %35, %4, %cst_18 {dimension_numbers = #tpu.dot_dimension_numbers<[1], [0], [0], [1], [0, 0, 1, 1], [], []>} : vector<8x32xf32>, vector<32x128xf32>, vector<8x128xf32> -> vector<8x128xf32>
    %41 = arith.addf %39, %40 : vector<8x128xf32>
    %42 = vector.broadcast %5 : vector<1x128xf32> to vector<8x128xf32>
    %43 = arith.addf %41, %42 : vector<8x128xf32>
    %44 = arith.negf %43 : vector<8x128xf32>
    %45 = math.exp %44 : vector<8x128xf32>
    %cst_19 = arith.constant 1.000000e+00 : f32
    %46 = vector.broadcast %cst_19 : f32 to vector<8x128xf32>
    %47 = arith.addf %46, %45 : vector<8x128xf32>
    %48 = arith.divf %46, %47 : vector<8x128xf32>
    %49 = math.tanh %43 : vector<8x128xf32>
    %50 = arith.select %11, %49, %48 : vector<8x128xi1>, vector<8x128xf32>
    %51 = vector.extract_strided_slice %50 {offsets = [0, 0], sizes = [8, 32], strides = [1, 1]} : vector<8x128xf32> to vector<8x32xf32>
    %52 = vector.extract_strided_slice %50 {offsets = [0, 32], sizes = [8, 32], strides = [1, 1]} : vector<8x128xf32> to vector<8x32xf32>
    %53 = vector.extract_strided_slice %50 {offsets = [0, 64], sizes = [8, 32], strides = [1, 1]} : vector<8x128xf32> to vector<8x32xf32>
    %54 = vector.extract_strided_slice %50 {offsets = [0, 96], sizes = [8, 32], strides = [1, 1]} : vector<8x128xf32> to vector<8x32xf32>
    %55 = arith.mulf %52, %33 : vector<8x32xf32>
    %56 = arith.mulf %51, %53 : vector<8x32xf32>
    %57 = arith.addf %55, %56 : vector<8x32xf32>
    %58 = math.tanh %57 : vector<8x32xf32>
    %59 = arith.mulf %54, %58 : vector<8x32xf32>
    %60 = arith.truncf %59 : vector<8x32xf32> to vector<8x32xbf16>
    %c0_20 = arith.constant 0 : index
    %c32_21 = arith.constant 32 : index
    %61 = vector.load %arg6[%c0_20, %c32_21] : memref<8x256xbf16, #tpu.memory_space<vmem>>, vector<8x32xbf16>
    tpu.vector_store %arg6[%c0_20, %c32_21], %60 {strides = array<i32>} : memref<8x256xbf16, #tpu.memory_space<vmem>>, vector<8x32xbf16>,
    %c0_22 = arith.constant 0 : index
    %c64 = arith.constant 64 : index
    %62 = vector.load %arg2[%c0_22, %c64] : memref<8x256xf32, #tpu.memory_space<vmem>>, vector<8x32xf32>
    %cst_23 = arith.constant dense<0.000000e+00> : vector<8x128xf32>
    %63 = tpu.matmul %62, %3, %cst_23 {dimension_numbers = #tpu.dot_dimension_numbers<[1], [0], [0], [1], [0, 0, 1, 1], [], []>} : vector<8x32xf32>, vector<32x128xf32>, vector<8x128xf32> -> vector<8x128xf32>
    %cst_24 = arith.constant dense<0.000000e+00> : vector<8x128xf32>
    %64 = tpu.matmul %59, %4, %cst_24 {dimension_numbers = #tpu.dot_dimension_numbers<[1], [0], [0], [1], [0, 0, 1, 1], [], []>} : vector<8x32xf32>, vector<32x128xf32>, vector<8x128xf32> -> vector<8x128xf32>
    %65 = arith.addf %63, %64 : vector<8x128xf32>
    %66 = vector.broadcast %5 : vector<1x128xf32> to vector<8x128xf32>
    %67 = arith.addf %65, %66 : vector<8x128xf32>
    %68 = arith.negf %67 : vector<8x128xf32>
    %69 = math.exp %68 : vector<8x128xf32>
    %cst_25 = arith.constant 1.000000e+00 : f32
    %70 = vector.broadcast %cst_25 : f32 to vector<8x128xf32>
    %71 = arith.addf %70, %69 : vector<8x128xf32>
    %72 = arith.divf %70, %71 : vector<8x128xf32>
    %73 = math.tanh %67 : vector<8x128xf32>
    %74 = arith.select %11, %73, %72 : vector<8x128xi1>, vector<8x128xf32>
    %75 = vector.extract_strided_slice %74 {offsets = [0, 0], sizes = [8, 32], strides = [1, 1]} : vector<8x128xf32> to vector<8x32xf32>
    %76 = vector.extract_strided_slice %74 {offsets = [0, 32], sizes = [8, 32], strides = [1, 1]} : vector<8x128xf32> to vector<8x32xf32>
    %77 = vector.extract_strided_slice %74 {offsets = [0, 64], sizes = [8, 32], strides = [1, 1]} : vector<8x128xf32> to vector<8x32xf32>
    %78 = vector.extract_strided_slice %74 {offsets = [0, 96], sizes = [8, 32], strides = [1, 1]} : vector<8x128xf32> to vector<8x32xf32>
    %79 = arith.mulf %76, %57 : vector<8x32xf32>
    %80 = arith.mulf %75, %77 : vector<8x32xf32>
    %81 = arith.addf %79, %80 : vector<8x32xf32>
    %82 = math.tanh %81 : vector<8x32xf32>
    %83 = arith.mulf %78, %82 : vector<8x32xf32>
    %84 = arith.truncf %83 : vector<8x32xf32> to vector<8x32xbf16>
    %c0_26 = arith.constant 0 : index
    %c64_27 = arith.constant 64 : index
    %85 = vector.load %arg6[%c0_26, %c64_27] : memref<8x256xbf16, #tpu.memory_space<vmem>>, vector<8x32xbf16>
    tpu.vector_store %arg6[%c0_26, %c64_27], %84 {strides = array<i32>} : memref<8x256xbf16, #tpu.memory_space<vmem>>, vector<8x32xbf16>,
    %c0_28 = arith.constant 0 : index
    %c96 = arith.constant 96 : index
    %86 = vector.load %arg2[%c0_28, %c96] : memref<8x256xf32, #tpu.memory_space<vmem>>, vector<8x32xf32>
    %cst_29 = arith.constant dense<0.000000e+00> : vector<8x128xf32>
    %87 = tpu.matmul %86, %3, %cst_29 {dimension_numbers = #tpu.dot_dimension_numbers<[1], [0], [0], [1], [0, 0, 1, 1], [], []>} : vector<8x32xf32>, vector<32x128xf32>, vector<8x128xf32> -> vector<8x128xf32>
    %cst_30 = arith.constant dense<0.000000e+00> : vector<8x128xf32>
    %88 = tpu.matmul %83, %4, %cst_30 {dimension_numbers = #tpu.dot_dimension_numbers<[1], [0], [0], [1], [0, 0, 1, 1], [], []>} : vector<8x32xf32>, vector<32x128xf32>, vector<8x128xf32> -> vector<8x128xf32>
    %89 = arith.addf %87, %88 : vector<8x128xf32>
    %90 = vector.broadcast %5 : vector<1x128xf32> to vector<8x128xf32>
    %91 = arith.addf %89, %90 : vector<8x128xf32>
    %92 = arith.negf %91 : vector<8x128xf32>
    %93 = math.exp %92 : vector<8x128xf32>
    %cst_31 = arith.constant 1.000000e+00 : f32
    %94 = vector.broadcast %cst_31 : f32 to vector<8x128xf32>
    %95 = arith.addf %94, %93 : vector<8x128xf32>
    %96 = arith.divf %94, %95 : vector<8x128xf32>
    %97 = math.tanh %91 : vector<8x128xf32>
    %98 = arith.select %11, %97, %96 : vector<8x128xi1>, vector<8x128xf32>
    %99 = vector.extract_strided_slice %98 {offsets = [0, 0], sizes = [8, 32], strides = [1, 1]} : vector<8x128xf32> to vector<8x32xf32>
    %100 = vector.extract_strided_slice %98 {offsets = [0, 32], sizes = [8, 32], strides = [1, 1]} : vector<8x128xf32> to vector<8x32xf32>
    %101 = vector.extract_strided_slice %98 {offsets = [0, 64], sizes = [8, 32], strides = [1, 1]} : vector<8x128xf32> to vector<8x32xf32>
    %102 = vector.extract_strided_slice %98 {offsets = [0, 96], sizes = [8, 32], strides = [1, 1]} : vector<8x128xf32> to vector<8x32xf32>
    %103 = arith.mulf %100, %81 : vector<8x32xf32>
    %104 = arith.mulf %99, %101 : vector<8x32xf32>
    %105 = arith.addf %103, %104 : vector<8x32xf32>
    %106 = math.tanh %105 : vector<8x32xf32>
    %107 = arith.mulf %102, %106 : vector<8x32xf32>
    %108 = arith.truncf %107 : vector<8x32xf32> to vector<8x32xbf16>
    %c0_32 = arith.constant 0 : index
    %c96_33 = arith.constant 96 : index
    %109 = vector.load %arg6[%c0_32, %c96_33] : memref<8x256xbf16, #tpu.memory_space<vmem>>, vector<8x32xbf16>
    tpu.vector_store %arg6[%c0_32, %c96_33], %108 {strides = array<i32>} : memref<8x256xbf16, #tpu.memory_space<vmem>>, vector<8x32xbf16>,
    %c0_34 = arith.constant 0 : index
    %c128 = arith.constant 128 : index
    %110 = vector.load %arg2[%c0_34, %c128] : memref<8x256xf32, #tpu.memory_space<vmem>>, vector<8x32xf32>
    %cst_35 = arith.constant dense<0.000000e+00> : vector<8x128xf32>
    %111 = tpu.matmul %110, %3, %cst_35 {dimension_numbers = #tpu.dot_dimension_numbers<[1], [0], [0], [1], [0, 0, 1, 1], [], []>} : vector<8x32xf32>, vector<32x128xf32>, vector<8x128xf32> -> vector<8x128xf32>
    %cst_36 = arith.constant dense<0.000000e+00> : vector<8x128xf32>
    %112 = tpu.matmul %107, %4, %cst_36 {dimension_numbers = #tpu.dot_dimension_numbers<[1], [0], [0], [1], [0, 0, 1, 1], [], []>} : vector<8x32xf32>, vector<32x128xf32>, vector<8x128xf32> -> vector<8x128xf32>
    %113 = arith.addf %111, %112 : vector<8x128xf32>
    %114 = vector.broadcast %5 : vector<1x128xf32> to vector<8x128xf32>
    %115 = arith.addf %113, %114 : vector<8x128xf32>
    %116 = arith.negf %115 : vector<8x128xf32>
    %117 = math.exp %116 : vector<8x128xf32>
    %cst_37 = arith.constant 1.000000e+00 : f32
    %118 = vector.broadcast %cst_37 : f32 to vector<8x128xf32>
    %119 = arith.addf %118, %117 : vector<8x128xf32>
    %120 = arith.divf %118, %119 : vector<8x128xf32>
    %121 = math.tanh %115 : vector<8x128xf32>
    %122 = arith.select %11, %121, %120 : vector<8x128xi1>, vector<8x128xf32>
    %123 = vector.extract_strided_slice %122 {offsets = [0, 0], sizes = [8, 32], strides = [1, 1]} : vector<8x128xf32> to vector<8x32xf32>
    %124 = vector.extract_strided_slice %122 {offsets = [0, 32], sizes = [8, 32], strides = [1, 1]} : vector<8x128xf32> to vector<8x32xf32>
    %125 = vector.extract_strided_slice %122 {offsets = [0, 64], sizes = [8, 32], strides = [1, 1]} : vector<8x128xf32> to vector<8x32xf32>
    %126 = vector.extract_strided_slice %122 {offsets = [0, 96], sizes = [8, 32], strides = [1, 1]} : vector<8x128xf32> to vector<8x32xf32>
    %127 = arith.mulf %124, %105 : vector<8x32xf32>
    %128 = arith.mulf %123, %125 : vector<8x32xf32>
    %129 = arith.addf %127, %128 : vector<8x32xf32>
    %130 = math.tanh %129 : vector<8x32xf32>
    %131 = arith.mulf %126, %130 : vector<8x32xf32>
    %132 = arith.truncf %131 : vector<8x32xf32> to vector<8x32xbf16>
    %c0_38 = arith.constant 0 : index
    %c128_39 = arith.constant 128 : index
    %133 = vector.load %arg6[%c0_38, %c128_39] : memref<8x256xbf16, #tpu.memory_space<vmem>>, vector<8x32xbf16>
    tpu.vector_store %arg6[%c0_38, %c128_39], %132 {strides = array<i32>} : memref<8x256xbf16, #tpu.memory_space<vmem>>, vector<8x32xbf16>,
    %c0_40 = arith.constant 0 : index
    %c160 = arith.constant 160 : index
    %134 = vector.load %arg2[%c0_40, %c160] : memref<8x256xf32, #tpu.memory_space<vmem>>, vector<8x32xf32>
    %cst_41 = arith.constant dense<0.000000e+00> : vector<8x128xf32>
    %135 = tpu.matmul %134, %3, %cst_41 {dimension_numbers = #tpu.dot_dimension_numbers<[1], [0], [0], [1], [0, 0, 1, 1], [], []>} : vector<8x32xf32>, vector<32x128xf32>, vector<8x128xf32> -> vector<8x128xf32>
    %cst_42 = arith.constant dense<0.000000e+00> : vector<8x128xf32>
    %136 = tpu.matmul %131, %4, %cst_42 {dimension_numbers = #tpu.dot_dimension_numbers<[1], [0], [0], [1], [0, 0, 1, 1], [], []>} : vector<8x32xf32>, vector<32x128xf32>, vector<8x128xf32> -> vector<8x128xf32>
    %137 = arith.addf %135, %136 : vector<8x128xf32>
    %138 = vector.broadcast %5 : vector<1x128xf32> to vector<8x128xf32>
    %139 = arith.addf %137, %138 : vector<8x128xf32>
    %140 = arith.negf %139 : vector<8x128xf32>
    %141 = math.exp %140 : vector<8x128xf32>
    %cst_43 = arith.constant 1.000000e+00 : f32
    %142 = vector.broadcast %cst_43 : f32 to vector<8x128xf32>
    %143 = arith.addf %142, %141 : vector<8x128xf32>
    %144 = arith.divf %142, %143 : vector<8x128xf32>
    %145 = math.tanh %139 : vector<8x128xf32>
    %146 = arith.select %11, %145, %144 : vector<8x128xi1>, vector<8x128xf32>
    %147 = vector.extract_strided_slice %146 {offsets = [0, 0], sizes = [8, 32], strides = [1, 1]} : vector<8x128xf32> to vector<8x32xf32>
    %148 = vector.extract_strided_slice %146 {offsets = [0, 32], sizes = [8, 32], strides = [1, 1]} : vector<8x128xf32> to vector<8x32xf32>
    %149 = vector.extract_strided_slice %146 {offsets = [0, 64], sizes = [8, 32], strides = [1, 1]} : vector<8x128xf32> to vector<8x32xf32>
    %150 = vector.extract_strided_slice %146 {offsets = [0, 96], sizes = [8, 32], strides = [1, 1]} : vector<8x128xf32> to vector<8x32xf32>
    %151 = arith.mulf %148, %129 : vector<8x32xf32>
    %152 = arith.mulf %147, %149 : vector<8x32xf32>
    %153 = arith.addf %151, %152 : vector<8x32xf32>
    %154 = math.tanh %153 : vector<8x32xf32>
    %155 = arith.mulf %150, %154 : vector<8x32xf32>
    %156 = arith.truncf %155 : vector<8x32xf32> to vector<8x32xbf16>
    %c0_44 = arith.constant 0 : index
    %c160_45 = arith.constant 160 : index
    %157 = vector.load %arg6[%c0_44, %c160_45] : memref<8x256xbf16, #tpu.memory_space<vmem>>, vector<8x32xbf16>
    tpu.vector_store %arg6[%c0_44, %c160_45], %156 {strides = array<i32>} : memref<8x256xbf16, #tpu.memory_space<vmem>>, vector<8x32xbf16>,
    %c0_46 = arith.constant 0 : index
    %c192 = arith.constant 192 : index
    %158 = vector.load %arg2[%c0_46, %c192] : memref<8x256xf32, #tpu.memory_space<vmem>>, vector<8x32xf32>
    %cst_47 = arith.constant dense<0.000000e+00> : vector<8x128xf32>
    %159 = tpu.matmul %158, %3, %cst_47 {dimension_numbers = #tpu.dot_dimension_numbers<[1], [0], [0], [1], [0, 0, 1, 1], [], []>} : vector<8x32xf32>, vector<32x128xf32>, vector<8x128xf32> -> vector<8x128xf32>
    %cst_48 = arith.constant dense<0.000000e+00> : vector<8x128xf32>
    %160 = tpu.matmul %155, %4, %cst_48 {dimension_numbers = #tpu.dot_dimension_numbers<[1], [0], [0], [1], [0, 0, 1, 1], [], []>} : vector<8x32xf32>, vector<32x128xf32>, vector<8x128xf32> -> vector<8x128xf32>
    %161 = arith.addf %159, %160 : vector<8x128xf32>
    %162 = vector.broadcast %5 : vector<1x128xf32> to vector<8x128xf32>
    %163 = arith.addf %161, %162 : vector<8x128xf32>
    %164 = arith.negf %163 : vector<8x128xf32>
    %165 = math.exp %164 : vector<8x128xf32>
    %cst_49 = arith.constant 1.000000e+00 : f32
    %166 = vector.broadcast %cst_49 : f32 to vector<8x128xf32>
    %167 = arith.addf %166, %165 : vector<8x128xf32>
    %168 = arith.divf %166, %167 : vector<8x128xf32>
    %169 = math.tanh %163 : vector<8x128xf32>
    %170 = arith.select %11, %169, %168 : vector<8x128xi1>, vector<8x128xf32>
    %171 = vector.extract_strided_slice %170 {offsets = [0, 0], sizes = [8, 32], strides = [1, 1]} : vector<8x128xf32> to vector<8x32xf32>
    %172 = vector.extract_strided_slice %170 {offsets = [0, 32], sizes = [8, 32], strides = [1, 1]} : vector<8x128xf32> to vector<8x32xf32>
    %173 = vector.extract_strided_slice %170 {offsets = [0, 64], sizes = [8, 32], strides = [1, 1]} : vector<8x128xf32> to vector<8x32xf32>
    %174 = vector.extract_strided_slice %170 {offsets = [0, 96], sizes = [8, 32], strides = [1, 1]} : vector<8x128xf32> to vector<8x32xf32>
    %175 = arith.mulf %172, %153 : vector<8x32xf32>
    %176 = arith.mulf %171, %173 : vector<8x32xf32>
    %177 = arith.addf %175, %176 : vector<8x32xf32>
    %178 = math.tanh %177 : vector<8x32xf32>
    %179 = arith.mulf %174, %178 : vector<8x32xf32>
    %180 = arith.truncf %179 : vector<8x32xf32> to vector<8x32xbf16>
    %c0_50 = arith.constant 0 : index
    %c192_51 = arith.constant 192 : index
    %181 = vector.load %arg6[%c0_50, %c192_51] : memref<8x256xbf16, #tpu.memory_space<vmem>>, vector<8x32xbf16>
    tpu.vector_store %arg6[%c0_50, %c192_51], %180 {strides = array<i32>} : memref<8x256xbf16, #tpu.memory_space<vmem>>, vector<8x32xbf16>,
    %c0_52 = arith.constant 0 : index
    %c224 = arith.constant 224 : index
    %182 = vector.load %arg2[%c0_52, %c224] : memref<8x256xf32, #tpu.memory_space<vmem>>, vector<8x32xf32>
    %cst_53 = arith.constant dense<0.000000e+00> : vector<8x128xf32>
    %183 = tpu.matmul %182, %3, %cst_53 {dimension_numbers = #tpu.dot_dimension_numbers<[1], [0], [0], [1], [0, 0, 1, 1], [], []>} : vector<8x32xf32>, vector<32x128xf32>, vector<8x128xf32> -> vector<8x128xf32>
    %cst_54 = arith.constant dense<0.000000e+00> : vector<8x128xf32>
    %184 = tpu.matmul %179, %4, %cst_54 {dimension_numbers = #tpu.dot_dimension_numbers<[1], [0], [0], [1], [0, 0, 1, 1], [], []>} : vector<8x32xf32>, vector<32x128xf32>, vector<8x128xf32> -> vector<8x128xf32>
    %185 = arith.addf %183, %184 : vector<8x128xf32>
    %186 = vector.broadcast %5 : vector<1x128xf32> to vector<8x128xf32>
    %187 = arith.addf %185, %186 : vector<8x128xf32>
    %188 = arith.negf %187 : vector<8x128xf32>
    %189 = math.exp %188 : vector<8x128xf32>
    %cst_55 = arith.constant 1.000000e+00 : f32
    %190 = vector.broadcast %cst_55 : f32 to vector<8x128xf32>
    %191 = arith.addf %190, %189 : vector<8x128xf32>
    %192 = arith.divf %190, %191 : vector<8x128xf32>
    %193 = math.tanh %187 : vector<8x128xf32>
    %194 = arith.select %11, %193, %192 : vector<8x128xi1>, vector<8x128xf32>
    %195 = vector.extract_strided_slice %194 {offsets = [0, 0], sizes = [8, 32], strides = [1, 1]} : vector<8x128xf32> to vector<8x32xf32>
    %196 = vector.extract_strided_slice %194 {offsets = [0, 32], sizes = [8, 32], strides = [1, 1]} : vector<8x128xf32> to vector<8x32xf32>
    %197 = vector.extract_strided_slice %194 {offsets = [0, 64], sizes = [8, 32], strides = [1, 1]} : vector<8x128xf32> to vector<8x32xf32>
    %198 = vector.extract_strided_slice %194 {offsets = [0, 96], sizes = [8, 32], strides = [1, 1]} : vector<8x128xf32> to vector<8x32xf32>
    %199 = arith.mulf %196, %177 : vector<8x32xf32>
    %200 = arith.mulf %195, %197 : vector<8x32xf32>
    %201 = arith.addf %199, %200 : vector<8x32xf32>
    %202 = math.tanh %201 : vector<8x32xf32>
    %203 = arith.mulf %198, %202 : vector<8x32xf32>
    %204 = arith.truncf %203 : vector<8x32xf32> to vector<8x32xbf16>
    %c0_56 = arith.constant 0 : index
    %c224_57 = arith.constant 224 : index
    %205 = vector.load %arg6[%c0_56, %c224_57] : memref<8x256xbf16, #tpu.memory_space<vmem>>, vector<8x32xbf16>
    tpu.vector_store %arg6[%c0_56, %c224_57], %204 {strides = array<i32>} : memref<8x256xbf16, #tpu.memory_space<vmem>>, vector<8x32xbf16>,
    %c0_58 = arith.constant 0 : index
    %c0_59 = arith.constant 0 : index
    %206 = vector.load %arg7[%c0_58, %c0_59] : memref<8x32xf32, #tpu.memory_space<vmem>>, vector<8x32xf32>
    tpu.vector_store %arg7[%c0_58, %c0_59], %203 {strides = array<i32>} : memref<8x32xf32, #tpu.memory_space<vmem>>, vector<8x32xf32>,
    %c0_60 = arith.constant 0 : index
    %c0_61 = arith.constant 0 : index
    %207 = vector.load %arg8[%c0_60, %c0_61] : memref<8x32xf32, #tpu.memory_space<vmem>>, vector<8x32xf32>
    tpu.vector_store %arg8[%c0_60, %c0_61], %201 {strides = array<i32>} : memref<8x32xf32, #tpu.memory_space<vmem>>, vector<8x32xf32>,
    return
  }
  func.func @transform_0(%arg0: i32, %arg1: i32) -> (i32, i32) {
    %c0_i32 = arith.constant 0 : i32
    return %arg0, %arg1 : i32, i32
  }
  func.func @transform_1(%arg0: i32, %arg1: i32) -> (i32, i32) {
    %c0_i32 = arith.constant 0 : i32
    %c0_i32_0 = arith.constant 0 : i32
    %c0_i32_1 = arith.constant 0 : i32
    return %c0_i32, %c0_i32_0 : i32, i32
  }
  func.func @transform_2(%arg0: i32, %arg1: i32) -> (i32, i32) {
    %c0_i32 = arith.constant 0 : i32
    %c0_i32_0 = arith.constant 0 : i32
    %c0_i32_1 = arith.constant 0 : i32
    return %c0_i32, %c0_i32_0 : i32, i32
  }
  func.func @transform_3(%arg0: i32, %arg1: i32) -> (i32, i32) {
    %c0_i32 = arith.constant 0 : i32
    %c0_i32_0 = arith.constant 0 : i32
    %c0_i32_1 = arith.constant 0 : i32
    return %c0_i32, %c0_i32_0 : i32, i32
  }
  func.func @transform_4(%arg0: i32, %arg1: i32) -> (i32, i32) {
    %c0_i32 = arith.constant 0 : i32
    return %arg0, %arg1 : i32, i32
  }
}

</mosaic_0001>

<bundles_post_ra>
// kernel: tpu_custom_call.1
= control target key start
LH: loop header
LB: loop body
LE: loop exit
PB: predicated region body
PF: predicated region fallthrough
CT: control target
= control target key end

     0   :  { %9 = vsyncpa [#allocation5], 0  ;;  %s3190_s0 = inlined_call_operand.hbm [shape: f32[16,256], index: 0, kind: input, shape index: {}]   ;;  %s3191_s1 = inlined_call_operand.hbm [shape: f32[32,128], index: 1, kind: input, shape index: {}]   ;;  %s3192_s2 = inlined_call_operand.hbm [shape: f32[32,128], index: 2, kind: input, shape index: {}]   ;;  %s3193_s3 = inlined_call_operand.vmem [shape: f32[1,128], index: 3, kind: input, shape index: {}]   ;;  %s3194_s4 = inlined_call_operand.hbm [shape: bf16[16,256], index: 4, kind: output, shape index: {}]  }
   0x1   :  { %11 = vsyncpa [#allocation5 + $0x1], 0 }
   0x2   :  { %12 = vsyncpa [#allocation8], 0 }
   0x3   :  { %13 = vsyncpa [#allocation6], 0 }
   0x4   :  { %15 = vsyncpa [#allocation6 + $0x1], 0  ;;  %s2669_s15 = smov 0   ;;  %s2671_s16 = smov 0  }
   0x5   :  { %s2673_s17 = smov 0   ;;  %s2675_s18 = smov 0  }
   0x6   :  { %s2677_s19 = smov 0   ;;  %s2679_s20 = smov 0  }
   0x7 LB: > { %s1893_s21 = sadd.s32 4294967295, %s2630_s20   ;;  %s1894_s22 = sadd.s32 4294967294, %s2630_s20   ;;  %s2630_s20 = sphi %s2679_s20, %s21_s20   ;;  %s2626_s19 = sphi %s2677_s19, %s3218_s19   ;;  %s2622_s18 = sphi %s2675_s18, %s3217_s18   ;;  %s2618_s17 = sphi %s2673_s17, %s3216_s17   ;;  %s2614_s16 = sphi %s2671_s16, %s3215_s16   ;;  %s2610_s15 = sphi %s2669_s15, %s3214_s15  }
   0x8   : > { %p55_p0 = scmp.ne.s32.totalorder %s2614_s16, %s2610_s15  ;;  %p2703_p1 = scmp.eq.s32.totalorder %s1893_s21, 0 }
   0x9   : > { %p2707_p2 = scmp.eq.s32.totalorder %s1893_s21, 1  ;;  %p150_p3 = scmp.eq.s32.totalorder %s1894_s22, 1 }
   0xa   : > { %s3199_s23 = scalar_select %p2703_p1, 1, 0 }
   0xb   : > { %p2713_p4 = por %p2703_p1, %p55_p0  ;;  %p1895_p5 = scmp.ge.s32.totalorder %s2630_s20, 1 }
   0xc   : > { %p2718_p6 = por %p150_p3, %p55_p0  ;;  %p157_p7 = scmp.lt.s32.totalorder %s2630_s20, 3 }
   0xd   : > { %s3201_s25 = scalar_select %p2713_p4, 1, 0 }
   0xe   : > { %s3202_s26 = scalar_select %p2718_p6, 1, 0 }
   0xf   : > { %p2723_p8 = pnand %p1895_p5, %p157_p7  ;;  %s2632_s28 = smov [#allocation7]  }
  0x10   : > { %s169_s29 = sshll.u32 %s2632_s28, 4  ;;  %s2633_s5 = smov [#allocation9]   ;;  %s2727_s29 = int_to_ptr.vmem [resolvable:$true] %s169_s29 }
  0x11   : > { %p2315_p9 = pneg %p2723_p8  ;;  %s182_s6 = sshll.u32 %s2633_s5, 4  ;;  %s2738_s6 = int_to_ptr.vmem [resolvable:$true] %s182_s6 }
  0x12   : > { %s2458_s9 = scalar_lea.hbm %s3191_s1, 512 }
  0x13   : > { %p2734_p11 = pnand %p2315_p9, %p2703_p1  ;;  %p2459_p12 = scmp.ne.s32.totalorder %s3191_s1, %s2458_s9 }
  0x14   : > { %p2465_p5 = scmp.lt.u32.totalorder %s2458_s9, %s3191_s1 }
  0x15   : > { %p2460_p13 = pneg %p2734_p11 }
  0x17   : > { %p2461_p0 = pnand %p2460_p13, %p2459_p12 }
  0x19   : > { %p2462_p3 = pneg %p2461_p0 }
  0x1b   : > { %p2467_p7 = pnand %p2465_p5, %p2462_p3 }
  0x1d   : > { %2470 = shalt.err (!%p2467_p7)
}
  0x1e   : > { %s2471_s14 = scalar_lea.vmem %s2727_s29, 512  ;;  %p2479_p1 = scmp.lt.s32.totalorder %s2727_s29, %s2727_s29 }
  0x1f   : > { %p2472_p9 = scmp.ne.s32.totalorder %s2727_s29, %s2471_s14  ;;  %p2480_p12 = scmp.lt.s32.totalorder %s2471_s14, %s2471_s14 }
  0x21   : > { %p2474_p10 = pnand %p2472_p9, %p2460_p13  ;;  %p2481_p0 = por %p2480_p12, %p2479_p1 }
  0x23   : > { %p2475_p6 = pneg %p2474_p10 }
  0x25   : > { %p2482_p4 = pnand %p2481_p0, %p2475_p6 }
  0x27   : > { %2485 = shalt.err (!%p2482_p4)
}
  0x28   : > { %s2634_s21 = smov 128   ;;  %s2635_s22 = smov 8  }
  0x29   : > { %2318 = dma.hbm_to_vmem [thread:$0]  (!%p2734_p11), %s3191_s1, 512, %s2727_s29, [#allocation8], %s2634_s21, %s2634_s21, %s2635_s22  }
  0x2a   : > { %s2486_s9 = scalar_lea.hbm %s3192_s2, 512 }
  0x2b   : > { %p2487_p1 = scmp.ne.s32.totalorder %s3192_s2, %s2486_s9  ;;  %p2493_p10 = scmp.lt.u32.totalorder %s2486_s9, %s3192_s2 }
  0x2d   : > { %p2489_p4 = pnand %p2487_p1, %p2460_p13 }
  0x2f   : > { %p2490_p6 = pneg %p2489_p4 }
  0x31   : > { %p2495_p3 = pnand %p2493_p10, %p2490_p6 }
  0x33   : > { %2498 = shalt.err (!%p2495_p3)
}
  0x34   : > { %s2499_s29 = scalar_lea.vmem %s2738_s6, 512  ;;  %p2507_p12 = scmp.lt.s32.totalorder %s2738_s6, %s2738_s6 }
  0x35   : > { %p2500_p5 = scmp.ne.s32.totalorder %s2738_s6, %s2499_s29  ;;  %p2508_p0 = scmp.lt.s32.totalorder %s2499_s29, %s2499_s29 }
  0x37   : > { %p2502_p7 = pnand %p2500_p5, %p2460_p13  ;;  %p2509_p1 = por %p2508_p0, %p2507_p12 }
  0x39   : > { %p2503_p9 = pneg %p2502_p7 }
  0x3b   : > { %p2510_p4 = pnand %p2509_p1, %p2503_p9 }
  0x3d   : > { %2513 = shalt.err (!%p2510_p4)
}
  0x3e   : > { %2321 = dma.hbm_to_vmem [thread:$0]  (!%p2734_p11), %s3192_s2, 512, %s2738_s6, [#allocation8], %s2634_s21, %s2634_s21, %s2635_s22  }
  0x3f   : > { %s33_s5 = sadd.s32 1, %s2626_s19  ;;  %s42_s7 = sadd.s32 1, %s2618_s17 }
  0x40   : > { %p35_p13 = scmp.ge.s32.totalorder %s33_s5, 2  ;;  %p49_p6 = scmp.ne.s32.totalorder %s2618_s17, %s2614_s16 }
  0x41   : > { %p50_p10 = scmp.eq.s32.totalorder %s2630_s20, 0  ;;  %p2332_p3 = scmp.lt.s32.totalorder %s2630_s20, 2 }
  0x42   : > { %s3220_s5 = smov (%p35_p13, %s33_s5), 0  ;;  %p2802_p7 = por %p2707_p2, %p49_p6 }
  0x43   : > { %p51_p5 = por %p50_p10, %p49_p6  ;;  %s37_s8 = ssub.s32 %s2626_s19, %s3220_s5 }
  0x44   : > { %s3205_s30 = scalar_select %p2802_p7, 1, 0 }
  0x45   : > { %s199_s9 = sand.u32 1, %s2618_s17   ;;  %p40_p9 = scmp.eq.s32.totalorder %s37_s8, 0 }
  0x46   : > { %s1899_s6 = sshll.u32 %s199_s9, 4  ;;  %s1943_s21 = sshll.u32 %s2626_s19, 8 }
  0x47   : > { %s2811_s22 = scalar_select %p40_p9, %s2618_s17, %s42_s7  }
  0x48   : > { %s2816_s12 = scalar_lea.hbm %s3190_s0, %s1943_s21  ;;  %s203_s24 = scalar_lea.vmem [#allocation4], %s1899_s6 }
  0x49   : > { %s213_s13 = sshll.u32 %s203_s24, 4  ;;  %p2820_p2 = pnand %p2332_p3, %p51_p5  ;;  %s2824_s13 = int_to_ptr.vmem [resolvable:$true] %s213_s13 }
  0x4a   : > { %s200_s14 = scalar_lea.sflag [#allocation5], %s199_s9  ;;  %s2514_s28 = scalar_lea.hbm %s2816_s12, 256 }
  0x4b   : > { %p2515_p11 = scmp.ne.s32.totalorder %s2816_s12, %s2514_s28  ;;  %p2516_p12 = pneg %p2820_p2 }
  0x4c   : > { %s2519_s6 = scalar_lea.hbm %s3190_s0, 512  ;;  %p2520_p4 = scmp.lt.u32.totalorder %s2816_s12, %s3190_s0 }
  0x4d   : > { %p2517_p0 = pnand %p2516_p12, %p2515_p11  ;;  %p2521_p13 = scmp.lt.u32.totalorder %s2519_s6, %s2514_s28 }
  0x4e   : > { %p2523_p10 = scmp.lt.u32.totalorder %s2514_s28, %s2816_s12 }
  0x4f   : > { %p2518_p1 = pneg %p2517_p0  ;;  %p2522_p6 = por %p2521_p13, %p2520_p4 }
  0x51   : > { %p2524_p3 = por %p2523_p10, %p2522_p6 }
  0x53   : > { %p2525_p5 = pnand %p2524_p3, %p2518_p1 }
  0x55   : > { %2528 = shalt.err (!%p2525_p5)
}
  0x56   : > { %s2529_s9 = scalar_lea.vmem %s2824_s13, 256  ;;  %s2636_s11 = smov [#allocation4]  }
  0x57   : > { %p2530_p9 = scmp.ne.s32.totalorder %s2824_s13, %s2529_s9  ;;  %s2534_s24 = sshll.u32 %s2636_s11, 4  ;;  %s2535_s24 = int_to_ptr.vmem [resolvable:$false] %s2534_s24 }
  0x58   : > { %s2536_s7 = scalar_lea.vmem %s2535_s24, 512  ;;  %p2537_p7 = scmp.lt.s32.totalorder %s2824_s13, %s2535_s24 }
  0x59   : > { %p2532_p11 = pnand %p2530_p9, %p2516_p12  ;;  %p2538_p4 = scmp.lt.s32.totalorder %s2536_s7, %s2529_s9 }
  0x5b   : > { %p2533_p0 = pneg %p2532_p11  ;;  %p2539_p13 = por %p2538_p4, %p2537_p7 }
  0x5d   : > { %p2540_p6 = pnand %p2539_p13, %p2533_p0 }
  0x5f   : > { %2543 = shalt.err (!%p2540_p6)
}
  0x60   : > { %2325 = dma.hbm_to_vmem [thread:$0]  (!%p2820_p2), %s2816_s12, 256, %s2824_s13, %s200_s14  }
  0x61   : > { %222 = sbr.rel (%p2723_p8) target bundleno = 5881 (0x16f9), region = 36  ;;  %s2854_s28 = sand.u32 (!%p2723_p8), 1, %s2614_s16  }
  0x62   : > { %s1903_s8 = sshll.u32 (!%p2723_p8), %s2854_s28, 4  ;;  %s225_s6 = scalar_lea.sflag (!%p2723_p8), [#allocation5], %s2854_s28 }
  0x63   : > { %s2858_s21 = scalar_lea.vmem (!%p2723_p8), [#allocation4], %s1903_s8  ;;  %p3207_p7 = scmp.ne.s32.totalorder (!%p2723_p8), %s3201_s25, 0 }
  0x68   : > { %2597 = dma.done.wait (%p3207_p7), %s225_s6, 256  }
  0x69   : > { %2599 = vsyncadd (%p3207_p7), %s225_s6, 4294967040  ;;  %p3208_p2 = scmp.ne.s32.totalorder %s3199_s23, 0 }
  0x6b   : > { %2601 = dma.done.wait (%p3208_p2), [#allocation8], 1024  }
  0x6c   : > { %2603 = vsyncadd (%p3208_p2), [#allocation8], 4294966272  ;;  %vm267_vm0 = vcmask 261120   ;;  %v2637_v0 = vmov 0.0|0.0   ;;  %v2638_v1 = vmov 0.0   ;;  %vm2639_vm1 = vmmov 0  }
  0x6d   : > { %2207 = vmatprep.subr.bf16.mxu0 %v2637_v0  ;;  %2213 = vmatprep.subr.bf16.mxu1 %v2637_v0  ;;  %268 = vst.msk [vmem:[#allocation2] sm:$0xff] %vm267_vm0, %v2638_v1  ;;  %269 = vst.msk [vmem:[#allocation3] sm:$0xff] %vm267_vm0, %v2638_v1  ;;  %v274_v2 = vld [vmem:[#allocation9] sm:$0xff]  ;;  %v275_v3 = vld [vmem:[#allocation9 + $0x8] sm:$0xff]  ;;  %v279_v25 = vlaneseq  ;;  %s2640_s27 = smov 64   ;;  %s2641_s12 = smov 32  }
  0x6e   : > { %2039 = vmatprep.mubr.msk.f32.mxu0 %vm2639_vm1, %v2638_v1  ;;  %2050 = vmatprep.mubr.msk.f32.mxu1 %vm2639_vm1, %v2638_v1  ;;  %v270_v4 = vld [vmem:[#allocation7] sm:$0xff]  ;;  %v2878_v5 = vpack.c.bf16 %v275_v3, %v274_v2  ;;  %v271_v6 = vld [vmem:[#allocation7 + $0x8] sm:$0xff]  ;;  %v276_v7 = vld [vmem:[#allocation9 + $0x10] sm:$0xff]  ;;  %s2642_s13 = smov 96   ;;  %s1906_s29 = sshll.u32 %s2854_s28, 3  ;;  %vm477_vm5 = vcmask 257024  }
  0x6f   : > { %v277_v8 = vld [vmem:[#allocation9 + $0x18] sm:$0xff]  ;;  %v2880_v9 = vpack.c.bf16 %v271_v6, %v270_v4  ;;  %v272_v10 = vld [vmem:[#allocation7 + $0x10] sm:$0xff]  ;;  %v280_v27 = vand.u32 127, %v279_v25  ;;  %s3104_s14 = scalar_lea.vmem [#allocation10], %s1906_s29  ;;  %vm663_vm6 = vcmask 519424   ;;  %vm849_vm7 = vcmask 781824  }
  0x70   : > { %v273_v11 = vld [vmem:[#allocation7 + $0x18] sm:$0xff]  ;;  %2209 = vmatpush3.bf16.msra.mxu0 %v2878_v5  ;;  %v2883_v12 = vpack.c.bf16 %v277_v8, %v276_v7  ;;  %v2893_v15 = vld [vmem:[%s2858_s21] sm:$0xff]  ;;  %vm1029_vm8 = vcmask 1044224   ;;  %s1950_s10 = sshll.u32 %s2622_s18, 7  ;;  %s1790_s9 = sshll.u32 %s3104_s14, 4  ;;  %s3137_s9 = int_to_ptr.vmem [resolvable:$true] %s1790_s9 }
  0x71   : > { %2215 = vmatpush3.bf16.msra.mxu1 %v2880_v9  ;;  %2210 = vmatprep.subr.bf16.mxu0 %v2637_v0  ;;  %v2887_v13 = vpack.c.bf16 %v273_v11, %v272_v10  ;;  %v2915_v17 = vld [vmem:[%s3193_s3] ss:$0 sm:$0xff]  ;;  %vm281_vm2 = vcmp.ge.s32.totalorder %v280_v27, 64  ;;  %vm282_vm3 = vcmp.lt.s32.totalorder %v280_v27, 96  ;;  %s3135_s7 = scalar_lea.hbm %s3194_s4, %s1950_s10  ;;  %s1774_s8 = scalar_lea.sflag [#allocation6], %s2854_s28 }
  0x72   : > { %2216 = vmatprep.subr.bf16.mxu1 %v2637_v0  ;;  %vm2918_vm4 = vmand %vm281_vm2, %vm282_vm3  ;;  %s2544_s6 = scalar_lea.vmem %s3137_s9, 128  ;;  %p3211_p12 = scmp.ne.s32.totalorder %s3205_s30, 0 }
  0x73   : > { %p2545_p8 = scmp.ne.s32.totalorder %s3137_s9, %s2544_s6  ;;  %s2643_s18 = smov [#allocation10]  }
  0x74   : > { %2212 = vmatpush3.bf16.msra.mxu0 %v2883_v12  ;;  %v284_v14 = vld [vmem:[#allocation2] sm:$0xff]  ;;  %v285_v32 = vld [vmem:[#allocation3] sm:$0xff] }
  0x75   : > { %2218 = vmatpush3.bf16.msra.mxu1 %v2887_v13  ;;  %2219 = vmatprep.subr.bf16.mxu0 %v2637_v0  ;;  %p2546_p1 = pnand %p2545_p8, %p3211_p12 }
  0x76   : > { %2225 = vmatprep.subr.bf16.mxu1 %v2637_v0 }
  0x77   : > { %2040 = vmatmul.mubr.msk.f32.vlgmr.msra.gmra.mrb[0].mxu0 %vm267_vm0, %v284_v14  ;;  %p2547_p10 = pneg %p2546_p1 }
  0x78   : > { %2051 = vmatmul.mubr.msk.f32.vlgmr.msra.gmra.mrb[0].mxu1 %vm267_vm0, %v2893_v15  ;;  %2221 = vmatpush3.bf16.msra.mxu0 %v2878_v5 }
  0x79   : > { %2227 = vmatpush3.bf16.msra.mxu1 %v2880_v9  ;;  %2222 = vmatprep.subr.bf16.mxu0 %v2637_v0 }
  0x7a   : > { %2228 = vmatprep.subr.bf16.mxu1 %v2637_v0  ;;  %2072 = vmatprep.mubr.msk.f32.mxu1 %vm2639_vm1, %v2638_v1 }
  0x7b   : > { %2061 = vmatprep.mubr.msk.f32.mxu0 %vm2639_vm1, %v2638_v1 }
  0x7c   : > { %2224 = vmatpush3.bf16.msra.mxu0 %v2883_v12 }
  0x7d   : > { %2230 = vmatpush3.bf16.msra.mxu1 %v2887_v13  ;;  %2231 = vmatprep.subr.bf16.mxu0 %v2637_v0 }
  0x7e   : > { %2237 = vmatprep.subr.bf16.mxu1 %v2637_v0 }
 0x14a   : > { %v357_v16 = vpop.f32.mrb[0].mxu0 }
 0x14b   : > { %v430_v18 = vpop.f32.mrb[0].mxu1  ;;  %v2041_v19 = vpop.f32.mrb[1].mxu0 }
 0x14c   : > { %v431_v20 = vadd.f32 %v430_v18, %v357_v16  ;;  %v2052_v21 = vpop.f32.mrb[1].mxu1 }
 0x14e   : > { %v440_v22 = vadd.f32 %v2915_v17, %v431_v20 }
 0x150   : > { %v1910_v23 = vmul.f32 -1.442695, %v440_v22 }
 0x152   : > { %2394 = vpow2.f32 %v1910_v23 }
 0x153   : > { %2396 = vtanh.f32 %v440_v22 }
 0x15c   : > { %v2395_v24 = vpop.eup %2394 }
 0x15d   : > { %v444_v26 = vadd.f32 1.0, %v2395_v24  ;;  %v2397_v29 = vpop.eup %2396 }
 0x15f   : > { %2398 = vrcp.f32 %v444_v26 }
 0x169   : > { %v2399_v30 = vpop.eup %2398 }
 0x16a   : > { %v448_v31 = vsel %vm2918_vm4, %v2397_v29, %v2399_v30 }
 0x16b   : > { %455 = vrot.lane.b32.xlu0 %v448_v31, %s2640_s27 }
 0x16f   : > { %450 = vrot.lane.b32.xlu0 %v285_v32, %s2641_s12 }
 0x1dd   : > { %v456_v33 = vpop.permute.xlu0 %455 }
 0x1de   : > { %v458_v34 = vmul.f32 %v456_v33, %v448_v31 }
 0x1e0   : > { %460 = vrot.lane.b32.xlu1 %v458_v34, %s2641_s12 }
 0x1e1   : > { %v451_v35 = vpop.permute.xlu0 %450 }
 0x1e2   : > { %v453_v36 = vmul.f32 %v451_v35, %v448_v31 }
 0x252   : > { %v461_v37 = vpop.permute.xlu1 %460 }
 0x253   : > { %v463_v38 = vadd.f32 %v461_v37, %v453_v36 }
 0x255   : > { %2400 = vtanh.f32 %v463_v38 }
 0x25f   : > { %v2401_v39 = vpop.eup %2400 }
 0x260   : > { %466 = vrot.lane.b32.xlu1 %v2401_v39, %s2640_s27 }
 0x264   : > { %556 = vrot.lane.b32.xlu1 %v2893_v15, %s2642_s13 }
 0x2d2   : > { %v467_v40 = vpop.permute.xlu1 %466 }
 0x2d3   : > { %v2930_v41 = vmul.f32 %v467_v40, %v448_v31 }
 0x2d5   : > { %481 = vrot.lane.b32.xlu0 %v2930_v41, %s2641_s12 }
 0x2d6   : > { %v557_v42 = vpop.permute.xlu1 %556 }
 0x2d7   : > { %2073 = vmatmul.mubr.msk.f32.vlgmr.msra.gmra.mrb[2].mxu1 %vm267_vm0, %v557_v42 }
 0x2d8   : > { %2239 = vmatpush3.bf16.msra.mxu1 %v2880_v9  ;;  %2094 = vmatprep.mubr.msk.f32.mxu1 %vm2639_vm1, %v2638_v1 }
 0x2d9   : > { %2240 = vmatprep.subr.bf16.mxu1 %v2637_v0 }
 0x2dc   : > { %2242 = vmatpush3.bf16.msra.mxu1 %v2887_v13 }
 0x2dd   : > { %2249 = vmatprep.subr.bf16.mxu1 %v2637_v0 }
 0x347   : > { %v482_v43 = vpop.permute.xlu0 %481 }
 0x348   : > { %2062 = vmatmul.mubr.msk.f32.vlgmr.msra.gmra.mrb[2].mxu0 %vm267_vm0, %v482_v43 }
 0x349   : > { %2233 = vmatpush3.bf16.msra.mxu0 %v2878_v5  ;;  %2083 = vmatprep.mubr.msk.f32.mxu0 %vm2639_vm1, %v2638_v1 }
 0x34a   : > { %2234 = vmatprep.subr.bf16.mxu0 %v2637_v0 }
 0x34d   : > { %2236 = vmatpush3.bf16.msra.mxu0 %v2883_v12 }
 0x34e   : > { %2243 = vmatprep.subr.bf16.mxu0 %v2637_v0 }
 0x3aa   : > { %v626_v44 = vpop.f32.mrb[2].mxu1 }
 0x3ab   : > { %v2074_v45 = vpop.f32.mrb[3].mxu1 }
 0x41b   : > { %v551_v46 = vpop.f32.mrb[2].mxu0 }
 0x41c   : > { %v627_v47 = vadd.f32 %v626_v44, %v551_v46  ;;  %v2063_v48 = vpop.f32.mrb[3].mxu0 }
 0x41e   : > { %v630_v49 = vadd.f32 %v2915_v17, %v627_v47 }
 0x420   : > { %v1914_v50 = vmul.f32 -1.442695, %v630_v49 }
 0x422   : > { %2402 = vpow2.f32 %v1914_v50  ;;  %v3006_v50 = vld [vmem:[%s2858_s21 + $0x8] sm:$0xff]  ;;  %s2548_s21 = sshll.u32 %s2643_s18, 4  ;;  %s2549_s21 = int_to_ptr.vmem [resolvable:$false] %s2548_s21 }
 0x423   : > { %2404 = vtanh.f32 %v630_v49  ;;  %s2550_s23 = scalar_lea.vmem %s2549_s21, 256  ;;  %p2551_p3 = scmp.lt.s32.totalorder %s3137_s9, %s2549_s21 }
 0x424   : > { %p2552_p5 = scmp.lt.s32.totalorder %s2550_s23, %s2544_s6 }
 0x426   : > { %p2553_p9 = por %p2552_p5, %p2551_p3 }
 0x428   : > { %p2554_p11 = pnand %p2553_p9, %p2547_p10 }
 0x42c   : > { %v2403_v51 = vpop.eup %2402 }
 0x42d   : > { %v634_v52 = vadd.f32 1.0, %v2403_v51  ;;  %v2405_v53 = vpop.eup %2404 }
 0x42f   : > { %2406 = vrcp.f32 %v634_v52 }
 0x439   : > { %v2407_v54 = vpop.eup %2406 }
 0x43a   : > { %v638_v55 = vsel %vm2918_vm4, %v2405_v53, %v2407_v54 }
 0x43b   : > { %641 = vrot.lane.b32.xlu0 %v638_v55, %s2640_s27  ;;  %v639_v58 = vmul.f32 %v638_v55, %v463_v38 }
 0x4ad   : > { %v642_v56 = vpop.permute.xlu0 %641 }
 0x4ae   : > { %v644_v57 = vmul.f32 %v642_v56, %v638_v55 }
 0x4b0   : > { %646 = vrot.lane.b32.xlu1 %v644_v57, %s2641_s12 }
 0x522   : > { %v647_v59 = vpop.permute.xlu1 %646 }
 0x523   : > { %v649_v60 = vadd.f32 %v647_v59, %v639_v58 }
 0x525   : > { %2408 = vtanh.f32 %v649_v60 }
 0x52f   : > { %v2409_v61 = vpop.eup %2408 }
 0x530   : > { %652 = vrot.lane.b32.xlu0 %v2409_v61, %s2640_s27 }
 0x534   : > { %742 = vrot.lane.b32.xlu0 %v2893_v15, %s2640_s27 }
 0x5a2   : > { %v653_v62 = vpop.permute.xlu0 %652 }
 0x5a3   : > { %v2956_v63 = vmul.f32 %v653_v62, %v638_v55 }
 0x5a5   : > { %667 = vrot.lane.b32.xlu1 %v2956_v63, %s2641_s12 }
 0x5a6   : > { %v743_v2 = vpop.permute.xlu0 %742 }
 0x5a7   : > { %2095 = vmatmul.mubr.msk.f32.vlgmr.msra.gmra.mrb[4].mxu1 %vm267_vm0, %v743_v2 }
 0x5a8   : > { %2251 = vmatpush3.bf16.msra.mxu1 %v2880_v9  ;;  %2116 = vmatprep.mubr.msk.f32.mxu1 %vm2639_vm1, %v2638_v1 }
 0x5a9   : > { %2252 = vmatprep.subr.bf16.mxu1 %v2637_v0 }
 0x5ac   : > { %2254 = vmatpush3.bf16.msra.mxu1 %v2887_v13 }
 0x5ad   : > { %2261 = vmatprep.subr.bf16.mxu1 %v2637_v0 }
 0x617   : > { %v668_v3 = vpop.permute.xlu1 %667 }
 0x618   : > { %2084 = vmatmul.mubr.msk.f32.vlgmr.msra.gmra.mrb[4].mxu0 %vm267_vm0, %v668_v3 }
 0x619   : > { %2245 = vmatpush3.bf16.msra.mxu0 %v2878_v5  ;;  %2105 = vmatprep.mubr.msk.f32.mxu0 %vm2639_vm1, %v2638_v1 }
 0x61a   : > { %2246 = vmatprep.subr.bf16.mxu0 %v2637_v0 }
 0x61d   : > { %2248 = vmatpush3.bf16.msra.mxu0 %v2883_v12 }
 0x61e   : > { %2255 = vmatprep.subr.bf16.mxu0 %v2637_v0 }
 0x67a   : > { %v812_v4 = vpop.f32.mrb[4].mxu1 }
 0x67b   : > { %v2096_v6 = vpop.f32.mrb[5].mxu1 }
 0x6eb   : > { %v737_v7 = vpop.f32.mrb[4].mxu0 }
 0x6ec   : > { %v813_v8 = vadd.f32 %v812_v4, %v737_v7  ;;  %v2085_v10 = vpop.f32.mrb[5].mxu0 }
 0x6ee   : > { %v816_v11 = vadd.f32 %v2915_v17, %v813_v8 }
 0x6f0   : > { %v1918_v14 = vmul.f32 -1.442695, %v816_v11 }
 0x6f2   : > { %2410 = vpow2.f32 %v1918_v14 }
 0x6f3   : > { %2412 = vtanh.f32 %v816_v11 }
 0x6fc   : > { %v2411_v16 = vpop.eup %2410 }
 0x6fd   : > { %v820_v18 = vadd.f32 1.0, %v2411_v16  ;;  %v2413_v19 = vpop.eup %2412 }
 0x6ff   : > { %2414 = vrcp.f32 %v820_v18 }
 0x709   : > { %v2415_v20 = vpop.eup %2414 }
 0x70a   : > { %v824_v21 = vsel %vm2918_vm4, %v2413_v19, %v2415_v20 }
 0x70b   : > { %827 = vrot.lane.b32.xlu1 %v824_v21, %s2640_s27  ;;  %v825_v24 = vmul.f32 %v824_v21, %v649_v60 }
 0x77d   : > { %v828_v22 = vpop.permute.xlu1 %827 }
 0x77e   : > { %v830_v23 = vmul.f32 %v828_v22, %v824_v21 }
 0x780   : > { %832 = vrot.lane.b32.xlu0 %v830_v23, %s2641_s12 }
 0x7f2   : > { %v833_v25 = vpop.permute.xlu0 %832 }
 0x7f3   : > { %v835_v26 = vadd.f32 %v833_v25, %v825_v24 }
 0x7f5   : > { %2416 = vtanh.f32 %v835_v26 }
 0x7ff   : > { %v2417_v27 = vpop.eup %2416 }
 0x800   : > { %838 = vrot.lane.b32.xlu1 %v2417_v27, %s2640_s27 }
 0x804   : > { %928 = vrot.lane.b32.xlu1 %v2893_v15, %s2641_s12 }
 0x872   : > { %v839_v29 = vpop.permute.xlu1 %838 }
 0x873   : > { %v2982_v30 = vmul.f32 %v839_v29, %v824_v21 }
 0x875   : > { %853 = vrot.lane.b32.xlu0 %v2982_v30, %s2641_s12  ;;  %v1946_v28 = vpack.c.bf16 %v2982_v30, %v2982_v30 }
 0x876   : > { %v929_v31 = vpop.permute.xlu1 %928 }
 0x877   : > { %2117 = vmatmul.mubr.msk.f32.vlgmr.msra.gmra.mrb[6].mxu1 %vm267_vm0, %v929_v31 }
 0x878   : > { %2263 = vmatpush3.bf16.msra.mxu1 %v2880_v9  ;;  %2138 = vmatprep.mubr.msk.f32.mxu1 %vm2639_vm1, %v2638_v1 }
 0x879   : > { %2264 = vmatprep.subr.bf16.mxu1 %v2637_v0 }
 0x87c   : > { %2266 = vmatpush3.bf16.msra.mxu1 %v2887_v13 }
 0x87d   : > { %2273 = vmatprep.subr.bf16.mxu1 %v2637_v0 }
 0x87f   : > { %2139 = vmatmul.mubr.msk.f32.vlgmr.msra.gmra.mrb[8].mxu1 %vm267_vm0, %v3006_v50 }
 0x880   : > { %2275 = vmatpush3.bf16.msra.mxu1 %v2880_v9  ;;  %2160 = vmatprep.mubr.msk.f32.mxu1 %vm2639_vm1, %v2638_v1 }
 0x881   : > { %2276 = vmatprep.subr.bf16.mxu1 %v2637_v0 }
 0x884   : > { %2278 = vmatpush3.bf16.msra.mxu1 %v2887_v13 }
 0x885   : > { %2285 = vmatprep.subr.bf16.mxu1 %v2637_v0 }
 0x8e7   : > { %v854_v15 = vpop.permute.xlu0 %853 }
 0x8e8   : > { %2106 = vmatmul.mubr.msk.f32.vlgmr.msra.gmra.mrb[6].mxu0 %vm267_vm0, %v854_v15 }
 0x8e9   : > { %2257 = vmatpush3.bf16.msra.mxu0 %v2878_v5  ;;  %2127 = vmatprep.mubr.msk.f32.mxu0 %vm2639_vm1, %v2638_v1 }
 0x8ea   : > { %2258 = vmatprep.subr.bf16.mxu0 %v2637_v0 }
 0x8ed   : > { %2260 = vmatpush3.bf16.msra.mxu0 %v2883_v12 }
 0x8ee   : > { %2267 = vmatprep.subr.bf16.mxu0 %v2637_v0 }
 0x94a   : > { %v998_v32 = vpop.f32.mrb[6].mxu1 }
 0x94b   : > { %v2118_v33 = vpop.f32.mrb[7].mxu1 }
 0x952   : > { %v1176_v54 = vpop.f32.mrb[8].mxu1 }
 0x953   : > { %v2140_v55 = vpop.f32.mrb[9].mxu1 }
 0x9bb   : > { %v923_v34 = vpop.f32.mrb[6].mxu0 }
 0x9bc   : > { %v999_v35 = vadd.f32 %v998_v32, %v923_v34  ;;  %v2107_v36 = vpop.f32.mrb[7].mxu0 }
 0x9be   : > { %v1002_v37 = vadd.f32 %v2915_v17, %v999_v35 }
 0x9c0   : > { %v1922_v38 = vmul.f32 -1.442695, %v1002_v37 }
 0x9c2   : > { %2418 = vpow2.f32 %v1922_v38 }
 0x9c3   : > { %2420 = vtanh.f32 %v1002_v37 }
 0x9cc   : > { %v2419_v39 = vpop.eup %2418 }
 0x9cd   : > { %v1006_v40 = vadd.f32 1.0, %v2419_v39  ;;  %v2421_v42 = vpop.eup %2420 }
 0x9cf   : > { %2422 = vrcp.f32 %v1006_v40 }
 0x9d9   : > { %v2423_v43 = vpop.eup %2422 }
 0x9da   : > { %v1010_v44 = vsel %vm2918_vm4, %v2421_v42, %v2423_v43 }
 0x9db   : > { %1013 = vrot.lane.b32.xlu0 %v1010_v44, %s2640_s27  ;;  %v1011_v47 = vmul.f32 %v1010_v44, %v835_v26 }
 0xa4d   : > { %v1014_v45 = vpop.permute.xlu0 %1013 }
 0xa4e   : > { %v1016_v46 = vmul.f32 %v1014_v45, %v1010_v44 }
 0xa50   : > { %1018 = vrot.lane.b32.xlu1 %v1016_v46, %s2641_s12 }
 0xac2   : > { %v1019_v48 = vpop.permute.xlu1 %1018 }
 0xac3   : > { %v1021_v49 = vadd.f32 %v1019_v48, %v1011_v47 }
 0xac5   : > { %2424 = vtanh.f32 %v1021_v49 }
 0xacf   : > { %v2425_v51 = vpop.eup %2424 }
 0xad0   : > { %1024 = vrot.lane.b32.xlu0 %v2425_v51, %s2640_s27 }
 0xb42   : > { %v1025_v52 = vpop.permute.xlu0 %1024 }
 0xb43   : > { %v3017_v53 = vmul.f32 %v1025_v52, %v1010_v44 }
 0xb45   : > { %1033 = vrot.lane.b32.xlu1 %v3017_v53, %s2641_s12 }
 0xbb7   : > { %v1034_v56 = vpop.permute.xlu1 %1033 }
 0xbb8   : > { %2128 = vmatmul.mubr.msk.f32.vlgmr.msra.gmra.mrb[8].mxu0 %vm267_vm0, %v1034_v56 }
 0xbb9   : > { %2269 = vmatpush3.bf16.msra.mxu0 %v2878_v5  ;;  %2149 = vmatprep.mubr.msk.f32.mxu0 %vm2639_vm1, %v2638_v1 }
 0xbba   : > { %2270 = vmatprep.subr.bf16.mxu0 %v2637_v0 }
 0xbbd   : > { %2272 = vmatpush3.bf16.msra.mxu0 %v2883_v12 }
 0xbbe   : > { %2279 = vmatprep.subr.bf16.mxu0 %v2637_v0 }
 0xc8b   : > { %v1103_v57 = vpop.f32.mrb[8].mxu0 }
 0xc8c   : > { %v1177_v58 = vadd.f32 %v1176_v54, %v1103_v57  ;;  %v2129_v59 = vpop.f32.mrb[9].mxu0 }
 0xc8e   : > { %v1180_v60 = vadd.f32 %v2915_v17, %v1177_v58 }
 0xc90   : > { %v1925_v61 = vmul.f32 -1.442695, %v1180_v60 }
 0xc92   : > { %2426 = vpow2.f32 %v1925_v61 }
 0xc93   : > { %2428 = vtanh.f32 %v1180_v60 }
 0xc9c   : > { %v2427_v62 = vpop.eup %2426 }
 0xc9d   : > { %v1184_v2 = vadd.f32 1.0, %v2427_v62  ;;  %v2429_v3 = vpop.eup %2428 }
 0xc9f   : > { %2430 = vrcp.f32 %v1184_v2 }
 0xca9   : > { %v2431_v4 = vpop.eup %2430 }
 0xcaa   : > { %v1188_v6 = vsel %vm2918_vm4, %v2429_v3, %v2431_v4 }
 0xcab   : > { %1191 = vrot.lane.b32.xlu0 %v1188_v6, %s2640_s27  ;;  %v1189_v10 = vmul.f32 %v1188_v6, %v1021_v49 }
 0xd1d   : > { %v1192_v7 = vpop.permute.xlu0 %1191 }
 0xd1e   : > { %v1194_v8 = vmul.f32 %v1192_v7, %v1188_v6 }
 0xd20   : > { %1196 = vrot.lane.b32.xlu1 %v1194_v8, %s2641_s12 }
 0xd92   : > { %v1197_v11 = vpop.permute.xlu1 %1196 }
 0xd93   : > { %v1199_v14 = vadd.f32 %v1197_v11, %v1189_v10 }
 0xd95   : > { %2432 = vtanh.f32 %v1199_v14 }
 0xd9f   : > { %v2433_v16 = vpop.eup %2432 }
 0xda0   : > { %1202 = vrot.lane.b32.xlu0 %v2433_v16, %s2640_s27 }
 0xda4   : > { %1291 = vrot.lane.b32.xlu0 %v3006_v50, %s2642_s13 }
 0xe12   : > { %v1203_v18 = vpop.permute.xlu0 %1202 }
 0xe13   : > { %v3036_v19 = vmul.f32 %v1203_v18, %v1188_v6 }
 0xe15   : > { %1216 = vrot.lane.b32.xlu1 %v3036_v19, %s2641_s12 }
 0xe16   : > { %v1292_v20 = vpop.permute.xlu0 %1291 }
 0xe17   : > { %2161 = vmatmul.mubr.msk.f32.vlgmr.msra.gmra.mrb[10].mxu1 %vm267_vm0, %v1292_v20 }
 0xe18   : > { %2287 = vmatpush3.bf16.msra.mxu1 %v2880_v9  ;;  %2182 = vmatprep.mubr.msk.f32.mxu1 %vm2639_vm1, %v2638_v1 }
 0xe19   : > { %2288 = vmatprep.subr.bf16.mxu1 %v2637_v0 }
 0xe1c   : > { %2290 = vmatpush3.bf16.msra.mxu1 %v2887_v13 }
 0xe1d   : > { %2297 = vmatprep.subr.bf16.mxu1 %v2637_v0 }
 0xe87   : > { %v1217_v21 = vpop.permute.xlu1 %1216 }
 0xe88   : > { %2150 = vmatmul.mubr.msk.f32.vlgmr.msra.gmra.mrb[10].mxu0 %vm267_vm0, %v1217_v21 }
 0xe89   : > { %2281 = vmatpush3.bf16.msra.mxu0 %v2878_v5  ;;  %2171 = vmatprep.mubr.msk.f32.mxu0 %vm2639_vm1, %v2638_v1 }
 0xe8a   : > { %2282 = vmatprep.subr.bf16.mxu0 %v2637_v0 }
 0xe8d   : > { %2284 = vmatpush3.bf16.msra.mxu0 %v2883_v12 }
 0xe8e   : > { %2291 = vmatprep.subr.bf16.mxu0 %v2637_v0 }
 0xeea   : > { %v1361_v22 = vpop.f32.mrb[10].mxu1 }
 0xeeb   : > { %v2162_v23 = vpop.f32.mrb[11].mxu1 }
 0xeec   : > { %v1945_v23 = vpack.c.bf16 %v2956_v63, %v2956_v63  ;;  %v1028_v63 = vpack.c.bf16 %v3017_v53, %v3017_v53 }
 0xf5b   : > { %v1286_v24 = vpop.f32.mrb[10].mxu0 }
 0xf5c   : > { %v1362_v25 = vadd.f32 %v1361_v22, %v1286_v24  ;;  %v2151_v26 = vpop.f32.mrb[11].mxu0 }
 0xf5e   : > { %v1365_v27 = vadd.f32 %v2915_v17, %v1362_v25 }
 0xf60   : > { %v1929_v29 = vmul.f32 -1.442695, %v1365_v27 }
 0xf62   : > { %2434 = vpow2.f32 %v1929_v29 }
 0xf63   : > { %2436 = vtanh.f32 %v1365_v27 }
 0xf6c   : > { %v2435_v31 = vpop.eup %2434 }
 0xf6d   : > { %v1369_v15 = vadd.f32 1.0, %v2435_v31  ;;  %v2437_v32 = vpop.eup %2436  ;;  %v1947_v31 = vpack.c.bf16 %v3036_v19, %v3036_v19 }
 0xf6f   : > { %2438 = vrcp.f32 %v1369_v15 }
 0xf79   : > { %v2439_v33 = vpop.eup %2438 }
 0xf7a   : > { %v1373_v34 = vsel %vm2918_vm4, %v2437_v32, %v2439_v33 }
 0xf7b   : > { %1376 = vrot.lane.b32.xlu1 %v1373_v34, %s2640_s27  ;;  %v1374_v37 = vmul.f32 %v1373_v34, %v1199_v14 }
 0xfed   : > { %v1377_v35 = vpop.permute.xlu1 %1376 }
 0xfee   : > { %v1379_v36 = vmul.f32 %v1377_v35, %v1373_v34 }
 0xff0   : > { %1381 = vrot.lane.b32.xlu0 %v1379_v36, %s2641_s12 }
0x1062   : > { %v1382_v38 = vpop.permute.xlu0 %1381 }
0x1063   : > { %v1384_v39 = vadd.f32 %v1382_v38, %v1374_v37 }
0x1065   : > { %2440 = vtanh.f32 %v1384_v39 }
0x106f   : > { %v2441_v40 = vpop.eup %2440 }
0x1070   : > { %1387 = vrot.lane.b32.xlu1 %v2441_v40, %s2640_s27 }
0x1074   : > { %1476 = vrot.lane.b32.xlu1 %v3006_v50, %s2640_s27 }
0x10e2   : > { %v1388_v42 = vpop.permute.xlu1 %1387 }
0x10e3   : > { %v3062_v43 = vmul.f32 %v1388_v42, %v1373_v34 }
0x10e5   : > { %1401 = vrot.lane.b32.xlu0 %v3062_v43, %s2641_s12  ;;  %v1948_v53 = vpack.c.bf16 %v3062_v43, %v3062_v43 }
0x10e6   : > { %v1477_v44 = vpop.permute.xlu1 %1476 }
0x10e7   : > { %2183 = vmatmul.mubr.msk.f32.vlgmr.msra.gmra.mrb[12].mxu1 %vm267_vm0, %v1477_v44 }
0x10e8   : > { %2299 = vmatpush3.bf16.msra.mxu1 %v2880_v9  ;;  %2204 = vmatprep.mubr.msk.f32.mxu1 %vm2639_vm1, %v2638_v1 }
0x10e9   : > { %2300 = vmatprep.subr.bf16.mxu1 %v2637_v0 }
0x10ec   : > { %2302 = vmatpush3.bf16.msra.mxu1 %v2887_v13 }
0x1157   : > { %v1402_v45 = vpop.permute.xlu0 %1401 }
0x1158   : > { %2172 = vmatmul.mubr.msk.f32.vlgmr.msra.gmra.mrb[12].mxu0 %vm267_vm0, %v1402_v45 }
0x1159   : > { %2293 = vmatpush3.bf16.msra.mxu0 %v2878_v5  ;;  %2193 = vmatprep.mubr.msk.f32.mxu0 %vm2639_vm1, %v2638_v1 }
0x115a   : > { %2294 = vmatprep.subr.bf16.mxu0 %v2637_v0 }
0x115d   : > { %2296 = vmatpush3.bf16.msra.mxu0 %v2883_v12 }
0x11ba   : > { %v1546_v9 = vpop.f32.mrb[12].mxu1 }
0x11bb   : > { %v2184_v46 = vpop.f32.mrb[13].mxu1 }
0x122b   : > { %v1471_v47 = vpop.f32.mrb[12].mxu0 }
0x122c   : > { %v1547_v48 = vadd.f32 %v1546_v9, %v1471_v47  ;;  %v2173_v49 = vpop.f32.mrb[13].mxu0 }
0x122e   : > { %v1550_v51 = vadd.f32 %v2915_v17, %v1547_v48 }
0x1230   : > { %v1933_v13 = vmul.f32 -1.442695, %v1550_v51 }
0x1232   : > { %2442 = vpow2.f32 %v1933_v13 }
0x1233   : > { %2444 = vtanh.f32 %v1550_v51 }
0x123c   : > { %v2443_v52 = vpop.eup %2442 }
0x123d   : > { %v1554_v54 = vadd.f32 1.0, %v2443_v52  ;;  %v2445_v5 = vpop.eup %2444 }
0x123f   : > { %2446 = vrcp.f32 %v1554_v54 }
0x1249   : > { %v2447_v55 = vpop.eup %2446 }
0x124a   : > { %v1558_v0 = vsel %vm2918_vm4, %v2445_v5, %v2447_v55 }
0x124b   : > { %1561 = vrot.lane.b32.xlu0 %v1558_v0, %s2640_s27  ;;  %v1559_v56 = vmul.f32 %v1558_v0, %v1384_v39 }
0x12bd   : > { %v1562_v1 = vpop.permute.xlu0 %1561 }
0x12be   : > { %v1564_v12 = vmul.f32 %v1562_v1, %v1558_v0 }
0x12c0   : > { %1566 = vrot.lane.b32.xlu1 %v1564_v12, %s2641_s12 }
0x1332   : > { %v1567_v57 = vpop.permute.xlu1 %1566 }
0x1333   : > { %v1569_v58 = vadd.f32 %v1567_v57, %v1559_v56 }
0x1335   : > { %2448 = vtanh.f32 %v1569_v58 }
0x133f   : > { %v2449_v59 = vpop.eup %2448 }
0x1340   : > { %1572 = vrot.lane.b32.xlu0 %v2449_v59, %s2640_s27 }
0x1344   : > { %1661 = vrot.lane.b32.xlu0 %v3006_v50, %s2641_s12 }
0x13b2   : > { %v1573_v60 = vpop.permute.xlu0 %1572 }
0x13b3   : > { %v1575_v61 = vmul.f32 %v1573_v60, %v1558_v0 }
0x13b5   : > { %1586 = vrot.lane.b32.xlu1 %v1575_v61, %s2641_s12  ;;  %v1949_v15 = vpack.c.bf16 %v1575_v61, %v1575_v61 }
0x13b6   : > { %v1662_v62 = vpop.permute.xlu0 %1661 }
0x13b7   : > { %2205 = vmatmul.mubr.msk.f32.vlgmr.msra.gmra.mrb[14].mxu1 %vm267_vm0, %v1662_v62 }
0x1427   : > { %v1587_v2 = vpop.permute.xlu1 %1586 }
0x1428   : > { %2194 = vmatmul.mubr.msk.f32.vlgmr.msra.gmra.mrb[14].mxu0 %vm267_vm0, %v1587_v2 }
0x148a   : > { %v1731_v3 = vpop.f32.mrb[14].mxu1 }
0x148b   : > { %v2206_v4 = vpop.f32.mrb[15].mxu1 }
0x14fb   : > { %v1656_v6 = vpop.f32.mrb[14].mxu0 }
0x14fc   : > { %v1732_v7 = vadd.f32 %v1731_v3, %v1656_v6  ;;  %v2195_v8 = vpop.f32.mrb[15].mxu0 }
0x14fe   : > { %v1735_v10 = vadd.f32 %v2915_v17, %v1732_v7  ;;  %v1944_v17 = vpack.c.bf16 %v2930_v41, %v2930_v41 }
0x1500   : > { %v1937_v11 = vmul.f32 -1.442695, %v1735_v10 }
0x1502   : > { %2450 = vpow2.f32 %v1937_v11 }
0x1503   : > { %2452 = vtanh.f32 %v1735_v10 }
0x150c   : > { %v2451_v50 = vpop.eup %2450 }
0x150d   : > { %v1739_v14 = vadd.f32 1.0, %v2451_v50  ;;  %v2453_v16 = vpop.eup %2452 }
0x150f   : > { %2454 = vrcp.f32 %v1739_v14 }
0x1519   : > { %v2455_v18 = vpop.eup %2454 }
0x151a   : > { %v1743_v20 = vsel %vm2918_vm4, %v2453_v16, %v2455_v18 }
0x151b   : > { %1746 = vrot.lane.b32.xlu1 %v1743_v20, %s2640_s27  ;;  %v1744_v24 = vmul.f32 %v1743_v20, %v1569_v58 }
0x158d   : > { %v1747_v21 = vpop.permute.xlu1 %1746 }
0x158e   : > { %v1749_v22 = vmul.f32 %v1747_v21, %v1743_v20 }
0x1590   : > { %1751 = vrot.lane.b32.xlu0 %v1749_v22, %s2641_s12 }
0x1594   : > { %474 = vrot.lane.b32.xlu0 %v1944_v17, %s2641_s12 }
0x1598   : > { %660 = vrot.lane.b32.xlu0 %v1945_v23, %s2640_s27 }
0x159c   : > { %846 = vrot.lane.b32.xlu0 %v1946_v28, %s2642_s13 }
0x1602   : > { %v1752_v25 = vpop.permute.xlu0 %1751 }
0x1603   : > { %v1754_v26 = vadd.f32 %v1752_v25, %v1744_v24 }
0x1605   : > { %2456 = vtanh.f32 %v1754_v26 }
0x1606   : > { %v475_v27 = vpop.permute.xlu0 %474 }
0x1607   : > { %478 = vst.msk [vmem:[%s3104_s14] sm:$0xf] %vm477_vm5, %v475_v27 }
0x160a   : > { %v661_v41 = vpop.permute.xlu0 %660 }
0x160b   : > { %664 = vst.msk [vmem:[%s3104_s14] sm:$0xf] %vm663_vm6, %v661_v41 }
0x160e   : > { %v847_v30 = vpop.permute.xlu0 %846 }
0x160f   : > { %v2457_v29 = vpop.eup %2456  ;;  %850 = vst.msk [vmem:[%s3104_s14] sm:$0xf] %vm849_vm7, %v847_v30 }
0x1610   : > { %1757 = vrot.lane.b32.xlu1 %v2457_v29, %s2640_s27  ;;  %1030 = vst.msk [vmem:[%s3104_s14] sm:$0xf] %vm1029_vm8, %v1028_v63 }
0x1614   : > { %1210 = vrot.lane.b32.xlu1 %v1947_v31, %s2641_s12 }
0x1618   : > { %1395 = vrot.lane.b32.xlu1 %v1948_v53, %s2640_s27 }
0x161c   : > { %1580 = vrot.lane.b32.xlu1 %v1949_v15, %s2642_s13 }
0x1620   : > { %1769 = vrot.lane.b32.xlu1 %v1754_v26, %s2642_s13 }
0x1682   : > { %v1758_v32 = vpop.permute.xlu1 %1757 }
0x1683   : > { %v1760_v33 = vmul.f32 %v1758_v32, %v1743_v20 }
0x1685   : > { %1764 = vrot.lane.b32.xlu0 %v1760_v33, %s2641_s12  ;;  %v1761_v35 = vpack.c.bf16 %v1760_v33, %v1760_v33 }
0x1686   : > { %v1211_v19 = vpop.permute.xlu1 %1210 }
0x1687   : > { %1213 = vst.msk [vmem:[%s3104_s14 + $0x4] sm:$0xf] %vm477_vm5, %v1211_v19 }
0x168a   : > { %v1396_v34 = vpop.permute.xlu1 %1395 }
0x168b   : > { %1398 = vst.msk [vmem:[%s3104_s14 + $0x4] sm:$0xf] %vm663_vm6, %v1396_v34 }
0x168e   : > { %v1581_v36 = vpop.permute.xlu1 %1580 }
0x168f   : > { %1583 = vst.msk [vmem:[%s3104_s14 + $0x4] sm:$0xf] %vm849_vm7, %v1581_v36 }
0x1690   : > { %1762 = vst.msk [vmem:[%s3104_s14 + $0x4] sm:$0xf] %vm1029_vm8, %v1761_v35 }
0x1691   : > { %2557 = shalt.err (!%p2554_p11)
}
0x1692   : > { %s2558_s28 = scalar_lea.hbm %s3135_s7, 128  ;;  %s2562_s12 = scalar_lea.hbm %s3194_s4, 256 }
0x1693   : > { %p2559_p0 = scmp.ne.s32.totalorder %s3135_s7, %s2558_s28  ;;  %p2563_p6 = scmp.lt.u32.totalorder %s3135_s7, %s3194_s4 }
0x1694   : > { %p2564_p7 = scmp.lt.u32.totalorder %s2562_s12, %s2558_s28  ;;  %p2566_p8 = scmp.lt.u32.totalorder %s2558_s28, %s3135_s7 }
0x1695   : > { %p2560_p4 = pnand %p2559_p0, %p3211_p12 }
0x1696   : > { %p2565_p2 = por %p2564_p7, %p2563_p6 }
0x1697   : > { %p2561_p13 = pneg %p2560_p4 }
0x1698   : > { %p2567_p1 = por %p2566_p8, %p2565_p2 }
0x169a   : > { %p2568_p10 = pnand %p2567_p1, %p2561_p13 }
0x169c   : > { %2571 = shalt.err (!%p2568_p10)
}
0x169d   : > { %2313 = dma.vmem_to_hbm [thread:$0]  (%p3211_p12), %s3137_s9, 128, %s3135_s7, %s1774_s8   ;;  %v1770_v37 = vpop.permute.xlu1 %1769 }
0x169e   : > { %1772 = vst.msk [vmem:[#allocation3] sm:$0xff] %vm267_vm0, %v1770_v37 }
0x16f7   : > { %v1765_v38 = vpop.permute.xlu0 %1764 }
0x16f8   : > { %1767 = vst.msk [vmem:[#allocation2] sm:$0xff] %vm267_vm0, %v1765_v38 }
0x16f9 PF: > { %s1802_s14 = sand.u32 1, %s2610_s15   ;;  %p3212_p3 = scmp.ne.s32.totalorder %s3202_s26, 0 }
0x16fa   : > { %p3213_p5 = scmp.ge.s32.totalorder %s2630_s20, 2  ;;  %s1803_s10 = scalar_lea.sflag [#allocation6], %s1802_s14 }
0x16fc   : > { %p2327_p9 = pnand %p3213_p5, %p3212_p3 }
0x16fe   : > { %2605 = dma.done.wait (!%p2327_p9), %s1803_s10, 128  }
0x16ff   : > { %2607 = vsyncadd (!%p2327_p9), %s1803_s10, 4294967168  ;;  %s21_s20 = sadd.s32 1, %s2630_s20   ;;  %s3214_s15 = smov %s2614_s16 }
0x1700   : > { %p18_p12 = scmp.ge.s32.totalorder %s21_s20, 4   ;;  %s3215_s16 = smov %s2618_s17 }
0x1701   : > { %s3216_s17 = smov %s2811_s22  ;;  %s3217_s18 = smov %s2626_s19 }
0x1702   : > { %s3218_s19 = smov %s3220_s5  ;;  %20 = sbr.rel (!%p18_p12) target bundleno = 7 (0x7), region = 93 }
0x1709   :  { %1808 = vsyncpa [#allocation5], 1 }
0x170a   :  { %1810 = vsyncpa [#allocation5 + $0x1], 1 }
0x170b   :  { %1811 = vsyncpa [#allocation8], 1 }
0x170c   :  { %1812 = vsyncpa [#allocation6], 1 }
0x170d   :  { %1814 = vsyncpa [#allocation6 + $0x1], 1 }

</bundles_post_ra>
